<compile_context>
chip_gen: v6e
topology: v6e:2x2x1
jax: 0.10.0
libtpu: 0.0.40
codegen_flags: <defaults>
</compile_context>

<pallas_src>
import functools

import jax
import jax.numpy as jnp
from jax import lax
from jax.experimental import pallas as pl
from jax.experimental.pallas import tpu as pltpu


# ---------------------------------------------------------------------------
# Small-channel path: NCHW, W on lanes, per-channel scalar weights in SMEM.
# ---------------------------------------------------------------------------
def _dwsep_small_kernel(xp_ref, wdw_ref, wpw_ref, o_ref, *, kh_n, kw_n):
    """One whole batch element per grid step.

    xp_ref : (1, Cin, H+2p, W+2p)  spatially pre-padded input, NCHW, VMEM
    wdw_ref: (Cin, KH*KW)          depthwise weights, f32 scalars in SMEM
    wpw_ref: (Cout, Cin)           pointwise weights, f32 scalars in SMEM
    o_ref  : (1, Cout, H, W)       output, NCHW, VMEM
    """
    _, cout, h, w = o_ref.shape
    cin = xp_ref.shape[1]

    # Depthwise KxK: unrolled shifted VPU MACs on (H, W) planes, f32 accumulation.
    dw = []
    for c in range(cin):
        acc = jnp.zeros((h, w), jnp.float32)
        for kh in range(kh_n):
            for kw in range(kw_n):
                tap = xp_ref[0, c, kh:kh + h, kw:kw + w].astype(jnp.float32)
                acc = acc + tap * wdw_ref[c, kh * kw_n + kw]
        dw.append(acc)

    # Pointwise 1x1: Cout x Cin scalar-broadcast MACs on the VPU.  At these channel
    # counts a 128x128-padded MXU contraction would be >97% zero work.
    for o in range(cout):
        out = dw[0] * wpw_ref[o, 0]
        for c in range(1, cin):
            out = out + dw[c] * wpw_ref[o, c]
        o_ref[0, o, :, :] = out.astype(o_ref.dtype)


def _dwsep_small(x, w_dw, w_pw, pad):
    n, cin, h, w = x.shape
    cout = w_pw.shape[0]
    kh, kw = w_dw.shape[2], w_dw.shape[3]
    hp, wp = h + 2 * pad, w + 2 * pad

    # Spatial halo pad only, stays NCHW: no channel padding, no transposes, so no
    # inflated HBM round trips around the kernel and nothing for the wrapper to undo.
    xp = jnp.pad(x, ((0, 0), (0, 0), (pad, pad), (pad, pad)))
    wdw = w_dw[:, 0, :, :].reshape(cin, kh * kw).astype(jnp.float32)
    wpw = w_pw[:, :, 0, 0].astype(jnp.float32)

    itemsize = jnp.dtype(x.dtype).itemsize
    flops = 2 * n * h * w * (kh * kw * cin + cin * cout)
    bytes_accessed = (xp.size + n * h * w * cout) * itemsize + (wdw.size + wpw.size) * 4

    kernel = functools.partial(_dwsep_small_kernel, kh_n=kh, kw_n=kw)
    return pl.pallas_call(
        kernel,
        out_shape=jax.ShapeDtypeStruct((n, cout, h, w), x.dtype),
        grid=(n,),
        in_specs=[
            pl.BlockSpec((1, cin, hp, wp), lambda b: (b, 0, 0, 0)),
            pl.BlockSpec(memory_space=pltpu.MemorySpace.SMEM),
            pl.BlockSpec(memory_space=pltpu.MemorySpace.SMEM),
        ],
        out_specs=pl.BlockSpec((1, cout, h, w), lambda b: (b, 0, 0, 0)),
        compiler_params=pltpu.CompilerParams(
            dimension_semantics=("parallel",),
            vmem_limit_bytes=32 * 1024 * 1024,
        ),
        cost_estimate=pl.CostEstimate(
            flops=int(flops), transcendentals=0, bytes_accessed=int(bytes_accessed)),
    )(xp, wdw, wpw)


# ---------------------------------------------------------------------------
# Lane-dense path: NHWC, channels on the 128-lane axis, MXU pointwise.
# ---------------------------------------------------------------------------
def _dwsep_lane_kernel(xp_ref, wdw_ref, wpw_ref, o_ref):
    """One (batch, row-tile) grid step.

    xp_ref : (1, H+2p, W+2p, Cin)  spatially padded NHWC image (resident per batch)
    wdw_ref: (KH, KW, Cin)         depthwise filters
    wpw_ref: (Cin, Cout)           pointwise mixing matrix
    o_ref  : (1, TH, W, Cout)      output row tile
    """
    r = pl.program_id(1)
    _, th, w_out, cout = o_ref.shape
    kh_n, kw_n, cin = wdw_ref.shape

    row0 = pl.multiple_of(r * th, th)
    # Hoisted halo slab: the TH + 2*pad unique rows are pulled from the ref once per
    # step; the per-tap kh slices below are static major-axis slices of the slab
    # (free) instead of three overlapping row reloads.
    slab = xp_ref[0, pl.ds(row0, th + kh_n - 1), :, :]        # (TH+2p, W+2p, Cin)
    wdw = wdw_ref[...]

    # Depthwise: 9 shifted VPU multiply-accumulates, per-channel scale broadcast
    # along the lane (channel) axis, f32 accumulation.
    acc = jnp.zeros((th, w_out, cin), jnp.float32)
    for kh in range(kh_n):
        rows = slab[kh:kh + th, :, :]
        for kw in range(kw_n):
            acc = acc + (rows[:, kw:kw + w_out, :] * wdw[kh, kw, :]).astype(jnp.float32)

    # Pointwise 1x1 == (TH*W, Cin) @ (Cin, Cout) on the MXU, f32 accumulation.
    # TODO(synk): for very large Cout (>= several hundred) add a grid axis blocking
    # the wpw/output N dim at 256; not needed at the tested sizes.
    wpw = wpw_ref[...]
    out = jnp.dot(acc.astype(wpw.dtype).reshape(th * w_out, cin), wpw,
                  preferred_element_type=jnp.float32)
    o_ref[...] = out.reshape(1, th, w_out, cout).astype(o_ref.dtype)


def _pick_row_tile(h, w, cin):
    """Largest divisor-of-H row tile whose f32 accumulator stays <= ~1.5 MiB."""
    for th in sorted((d for d in range(1, h + 1) if h % d == 0), reverse=True):
        if th * w * cin * 4 <= 3 * 2**19:
            return th
    return 1


def _dwsep_lane(x, w_dw, w_pw, pad):
    n, cin, h, w = x.shape
    cout = w_pw.shape[0]
    kh, kw = w_dw.shape[2], w_dw.shape[3]
    hp, wp = h + 2 * pad, w + 2 * pad
    itemsize = jnp.dtype(x.dtype).itemsize

    th = _pick_row_tile(h, w, cin)
    n_rows = h // th

    # NCHW -> NHWC + spatial halo pad only; channels are NOT zero-padded to 128
    # anymore (full-extent channel blocks are legal), so no inflated HBM copies.
    x_pad = jnp.pad(jnp.transpose(x, (0, 2, 3, 1)),
                    ((0, 0), (pad, pad), (pad, pad), (0, 0)))
    wdw = jnp.transpose(w_dw[:, 0, :, :], (1, 2, 0)).astype(x.dtype)   # (KH, KW, Cin)
    wpw = jnp.transpose(w_pw[:, :, 0, 0], (1, 0)).astype(x.dtype)      # (Cin, Cout)

    # The padded image stays resident in VMEM across the row tiles of a batch element
    # (its index_map ignores r, so Pallas skips the re-DMA).  When a double-buffered
    # copy of it would eat the VMEM budget (v7x has only 64 MiB physical), drop it to
    # a single buffer: one exposed DMA per batch element, amortized over n_rows tiles.
    in_block_bytes = hp * wp * cin * itemsize
    if 2 * in_block_bytes > 24 * 2**20:
        x_spec = pl.BlockSpec((1, hp, wp, cin), lambda b, r: (b, 0, 0, 0),
                              pipeline_mode=pl.Buffered(1))
        x_bufs = 1
    else:
        x_spec = pl.BlockSpec((1, hp, wp, cin), lambda b, r: (b, 0, 0, 0))
        x_bufs = 2

    out_block_bytes = th * w * cout * itemsize
    est_vmem = (x_bufs * in_block_bytes + 2 * out_block_bytes
                + (wdw.size + wpw.size) * itemsize
                + 2 * th * w * cin * 4)                 # accumulator / slab temps
    vmem_limit = int(min(48 * 2**20, max(32 * 2**20, 2 * est_vmem)))

    flops = 2 * n * h * w * (kh * kw * cin + cin * cout)
    bytes_accessed = (x_pad.size + wdw.size + wpw.size + n * h * w * cout) * itemsize

    out_nhwc = pl.pallas_call(
        _dwsep_lane_kernel,
        out_shape=jax.ShapeDtypeStruct((n, h, w, cout), x.dtype),
        grid=(n, n_rows),
        in_specs=[
            x_spec,
            pl.BlockSpec((kh, kw, cin), lambda b, r: (0, 0, 0)),
            pl.BlockSpec((cin, cout), lambda b, r: (0, 0)),
        ],
        out_specs=pl.BlockSpec((1, th, w, cout), lambda b, r: (b, r, 0, 0)),
        compiler_params=pltpu.CompilerParams(
            # Row tiles carry no accumulator across r, so both axes are parallel
            # (lets v7x's two TensorCores split either axis; neutral on v5e/v6e).
            dimension_semantics=("parallel", "parallel"),
            vmem_limit_bytes=vmem_limit,
        ),
        cost_estimate=pl.CostEstimate(
            flops=int(flops), transcendentals=0, bytes_accessed=int(bytes_accessed)),
    )(x_pad, wdw, wpw)

    # TODO(synk): this NHWC->NCHW transpose only honours the PyTorch NCHW interface;
    # an NHWC consumer should take out_nhwc directly.
    return jnp.transpose(out_nhwc, (0, 3, 1, 2))


# ---------------------------------------------------------------------------
# Public entry point (matches the PyTorch module's forward).
# ---------------------------------------------------------------------------
def depthwise_separable_conv(x_nchw, w_dw, w_pw, *, padding=1):
    """x_nchw: (N, Cin, H, W); w_dw: (Cin, 1, KH, KW); w_pw: (Cout, Cin, 1, 1)."""
    n, cin, h, w = x_nchw.shape
    cout = w_pw.shape[0]
    kh, kw = w_dw.shape[2], w_dw.shape[3]
    assert kh == kw and padding == (kh - 1) // 2, "kernel assumes stride=1, same padding"

    # Small-channel fast path: the unroll (cin*k*k + cin*cout MACs) is cheap and it
    # avoids >97%-zero MXU/VPU work plus padded HBM round trips.  For Cin/Cout in the
    # >=128 regime the lane-dense MXU layout is the right one.
    if cin * (kh * kw) + cin * cout <= 512:
        return _dwsep_small(x_nchw, w_dw, w_pw, padding)
    return _dwsep_lane(x_nchw, w_dw, w_pw, padding)


def _reference(x_nchw, w_dw, w_pw, *, padding=1):
    """Pure-JAX reference using lax.conv_general_dilated (NCHW, like PyTorch)."""
    cin = x_nchw.shape[1]
    dw = lax.conv_general_dilated(
        x_nchw, w_dw, window_strides=(1, 1),
        padding=[(padding, padding), (padding, padding)],
        dimension_numbers=("NCHW", "OIHW", "NCHW"),
        feature_group_count=cin)
    return lax.conv_general_dilated(
        dw, w_pw, window_strides=(1, 1), padding=[(0, 0), (0, 0)],
        dimension_numbers=("NCHW", "OIHW", "NCHW"))


if __name__ == "__main__":
    # Small shapes consistent with the module: batch=2, Cin=4, Cout=8, 16x16.
    N, CIN, COUT, H, W, K = 2, 4, 8, 16, 16, 3

    key = jax.random.PRNGKey(0)
    kx, kdw, kpw = jax.random.split(key, 3)

    x = jax.random.normal(kx, (N, CIN, H, W), dtype=jnp.float32)
    w_dw = jax.random.normal(kdw, (CIN, 1, K, K), dtype=jnp.float32) * 0.1
    w_pw = jax.random.normal(kpw, (COUT, CIN, 1, 1), dtype=jnp.float32) * 0.1

    out = jax.block_until_ready(depthwise_separable_conv(x, w_dw, w_pw, padding=1))
    ref = jax.block_until_ready(_reference(x, w_dw, w_pw, padding=1))
    assert out.shape == (N, COUT, H, W)
    assert jnp.allclose(out, ref, atol=1e-4, rtol=1e-4), "small-channel path mismatch"

    # Also exercise the lane-dense (large-channel) path once at a small size.
    C2 = 128
    x2 = jax.random.normal(kx, (1, C2, H, W), dtype=jnp.float32)
    w_dw2 = jax.random.normal(kdw, (C2, 1, K, K), dtype=jnp.float32) * 0.1
    w_pw2 = jax.random.normal(kpw, (C2, C2, 1, 1), dtype=jnp.float32) * 0.1
    out2 = jax.block_until_ready(depthwise_separable_conv(x2, w_dw2, w_pw2, padding=1))
    ref2 = jax.block_until_ready(_reference(x2, w_dw2, w_pw2, padding=1))
    assert out2.shape == (1, C2, H, W)
    assert jnp.allclose(out2, ref2, atol=5e-3, rtol=5e-3), "lane-dense path mismatch"

    print("KERNEL_OK")
</pallas_src>

<mosaic_0001>
module attributes {stable_mosaic.version = 11 : i64} {
  func.func @_dwsep_small_kernel(%arg0: i32, %arg1: memref<1x4x18x18xf32, #tpu.memory_space<vmem>>, %arg2: memref<4x9xf32, #tpu.memory_space<smem>>, %arg3: memref<8x4xf32, #tpu.memory_space<smem>>, %arg4: memref<1x8x16x16xf32, #tpu.memory_space<vmem>>) attributes {dimension_semantics = [#tpu.dimension_semantics<parallel>], iteration_bounds = array<i64: 2>, scalar_prefetch = 0 : i64, scratch_operands = 0 : i64, tpu.core_type = #tpu.core_type<tc>, window_params = [{transform_indices = @transform_0, window_bounds = array<i64: 1, 4, 18, 18>}, {transform_indices = @transform_1, window_bounds = array<i64: 4, 9>}, {transform_indices = @transform_2, window_bounds = array<i64: 8, 4>}, {transform_indices = @transform_3, window_bounds = array<i64: 1, 8, 16, 16>}]} {
    %cst = arith.constant 0.000000e+00 : f32
    %0 = vector.broadcast %cst : f32 to vector<16x16xf32>
    %c0 = arith.constant 0 : index
    %c0_0 = arith.constant 0 : index
    %c0_1 = arith.constant 0 : index
    %c0_2 = arith.constant 0 : index
    %1 = vector.load %arg1[%c0, %c0_0, %c0_1, %c0_2] : memref<1x4x18x18xf32, #tpu.memory_space<vmem>>, vector<1x1x16x16xf32>
    %2 = vector.shape_cast %1 : vector<1x1x16x16xf32> to vector<16x16xf32>
    %c0_3 = arith.constant 0 : index
    %c0_4 = arith.constant 0 : index
    %3 = memref.load %arg2[%c0_3, %c0_4] : memref<4x9xf32, #tpu.memory_space<smem>>
    %4 = vector.broadcast %3 : f32 to vector<16x16xf32>
    %5 = arith.mulf %2, %4 : vector<16x16xf32>
    %6 = arith.addf %0, %5 : vector<16x16xf32>
    %c0_5 = arith.constant 0 : index
    %c0_6 = arith.constant 0 : index
    %c0_7 = arith.constant 0 : index
    %c1 = arith.constant 1 : index
    %7 = vector.load %arg1[%c0_5, %c0_6, %c0_7, %c1] : memref<1x4x18x18xf32, #tpu.memory_space<vmem>>, vector<1x1x16x16xf32>
    %8 = vector.shape_cast %7 : vector<1x1x16x16xf32> to vector<16x16xf32>
    %c0_8 = arith.constant 0 : index
    %c1_9 = arith.constant 1 : index
    %9 = memref.load %arg2[%c0_8, %c1_9] : memref<4x9xf32, #tpu.memory_space<smem>>
    %10 = vector.broadcast %9 : f32 to vector<16x16xf32>
    %11 = arith.mulf %8, %10 : vector<16x16xf32>
    %12 = arith.addf %6, %11 : vector<16x16xf32>
    %c0_10 = arith.constant 0 : index
    %c0_11 = arith.constant 0 : index
    %c0_12 = arith.constant 0 : index
    %c2 = arith.constant 2 : index
    %13 = vector.load %arg1[%c0_10, %c0_11, %c0_12, %c2] : memref<1x4x18x18xf32, #tpu.memory_space<vmem>>, vector<1x1x16x16xf32>
    %14 = vector.shape_cast %13 : vector<1x1x16x16xf32> to vector<16x16xf32>
    %c0_13 = arith.constant 0 : index
    %c2_14 = arith.constant 2 : index
    %15 = memref.load %arg2[%c0_13, %c2_14] : memref<4x9xf32, #tpu.memory_space<smem>>
    %16 = vector.broadcast %15 : f32 to vector<16x16xf32>
    %17 = arith.mulf %14, %16 : vector<16x16xf32>
    %18 = arith.addf %12, %17 : vector<16x16xf32>
    %c0_15 = arith.constant 0 : index
    %c0_16 = arith.constant 0 : index
    %c1_17 = arith.constant 1 : index
    %c0_18 = arith.constant 0 : index
    %19 = vector.load %arg1[%c0_15, %c0_16, %c1_17, %c0_18] : memref<1x4x18x18xf32, #tpu.memory_space<vmem>>, vector<1x1x16x16xf32>
    %20 = vector.shape_cast %19 : vector<1x1x16x16xf32> to vector<16x16xf32>
    %c0_19 = arith.constant 0 : index
    %c3 = arith.constant 3 : index
    %21 = memref.load %arg2[%c0_19, %c3] : memref<4x9xf32, #tpu.memory_space<smem>>
    %22 = vector.broadcast %21 : f32 to vector<16x16xf32>
    %23 = arith.mulf %20, %22 : vector<16x16xf32>
    %24 = arith.addf %18, %23 : vector<16x16xf32>
    %c0_20 = arith.constant 0 : index
    %c0_21 = arith.constant 0 : index
    %c1_22 = arith.constant 1 : index
    %c1_23 = arith.constant 1 : index
    %25 = vector.load %arg1[%c0_20, %c0_21, %c1_22, %c1_23] : memref<1x4x18x18xf32, #tpu.memory_space<vmem>>, vector<1x1x16x16xf32>
    %26 = vector.shape_cast %25 : vector<1x1x16x16xf32> to vector<16x16xf32>
    %c0_24 = arith.constant 0 : index
    %c4 = arith.constant 4 : index
    %27 = memref.load %arg2[%c0_24, %c4] : memref<4x9xf32, #tpu.memory_space<smem>>
    %28 = vector.broadcast %27 : f32 to vector<16x16xf32>
    %29 = arith.mulf %26, %28 : vector<16x16xf32>
    %30 = arith.addf %24, %29 : vector<16x16xf32>
    %c0_25 = arith.constant 0 : index
    %c0_26 = arith.constant 0 : index
    %c1_27 = arith.constant 1 : index
    %c2_28 = arith.constant 2 : index
    %31 = vector.load %arg1[%c0_25, %c0_26, %c1_27, %c2_28] : memref<1x4x18x18xf32, #tpu.memory_space<vmem>>, vector<1x1x16x16xf32>
    %32 = vector.shape_cast %31 : vector<1x1x16x16xf32> to vector<16x16xf32>
    %c0_29 = arith.constant 0 : index
    %c5 = arith.constant 5 : index
    %33 = memref.load %arg2[%c0_29, %c5] : memref<4x9xf32, #tpu.memory_space<smem>>
    %34 = vector.broadcast %33 : f32 to vector<16x16xf32>
    %35 = arith.mulf %32, %34 : vector<16x16xf32>
    %36 = arith.addf %30, %35 : vector<16x16xf32>
    %c0_30 = arith.constant 0 : index
    %c0_31 = arith.constant 0 : index
    %c2_32 = arith.constant 2 : index
    %c0_33 = arith.constant 0 : index
    %37 = vector.load %arg1[%c0_30, %c0_31, %c2_32, %c0_33] : memref<1x4x18x18xf32, #tpu.memory_space<vmem>>, vector<1x1x16x16xf32>
    %38 = vector.shape_cast %37 : vector<1x1x16x16xf32> to vector<16x16xf32>
    %c0_34 = arith.constant 0 : index
    %c6 = arith.constant 6 : index
    %39 = memref.load %arg2[%c0_34, %c6] : memref<4x9xf32, #tpu.memory_space<smem>>
    %40 = vector.broadcast %39 : f32 to vector<16x16xf32>
    %41 = arith.mulf %38, %40 : vector<16x16xf32>
    %42 = arith.addf %36, %41 : vector<16x16xf32>
    %c0_35 = arith.constant 0 : index
    %c0_36 = arith.constant 0 : index
    %c2_37 = arith.constant 2 : index
    %c1_38 = arith.constant 1 : index
    %43 = vector.load %arg1[%c0_35, %c0_36, %c2_37, %c1_38] : memref<1x4x18x18xf32, #tpu.memory_space<vmem>>, vector<1x1x16x16xf32>
    %44 = vector.shape_cast %43 : vector<1x1x16x16xf32> to vector<16x16xf32>
    %c0_39 = arith.constant 0 : index
    %c7 = arith.constant 7 : index
    %45 = memref.load %arg2[%c0_39, %c7] : memref<4x9xf32, #tpu.memory_space<smem>>
    %46 = vector.broadcast %45 : f32 to vector<16x16xf32>
    %47 = arith.mulf %44, %46 : vector<16x16xf32>
    %48 = arith.addf %42, %47 : vector<16x16xf32>
    %c0_40 = arith.constant 0 : index
    %c0_41 = arith.constant 0 : index
    %c2_42 = arith.constant 2 : index
    %c2_43 = arith.constant 2 : index
    %49 = vector.load %arg1[%c0_40, %c0_41, %c2_42, %c2_43] : memref<1x4x18x18xf32, #tpu.memory_space<vmem>>, vector<1x1x16x16xf32>
    %50 = vector.shape_cast %49 : vector<1x1x16x16xf32> to vector<16x16xf32>
    %c0_44 = arith.constant 0 : index
    %c8 = arith.constant 8 : index
    %51 = memref.load %arg2[%c0_44, %c8] : memref<4x9xf32, #tpu.memory_space<smem>>
    %52 = vector.broadcast %51 : f32 to vector<16x16xf32>
    %53 = arith.mulf %50, %52 : vector<16x16xf32>
    %54 = arith.addf %48, %53 : vector<16x16xf32>
    %cst_45 = arith.constant 0.000000e+00 : f32
    %55 = vector.broadcast %cst_45 : f32 to vector<16x16xf32>
    %c0_46 = arith.constant 0 : index
    %c1_47 = arith.constant 1 : index
    %c0_48 = arith.constant 0 : index
    %c0_49 = arith.constant 0 : index
    %56 = vector.load %arg1[%c0_46, %c1_47, %c0_48, %c0_49] : memref<1x4x18x18xf32, #tpu.memory_space<vmem>>, vector<1x1x16x16xf32>
    %57 = vector.shape_cast %56 : vector<1x1x16x16xf32> to vector<16x16xf32>
    %c1_50 = arith.constant 1 : index
    %c0_51 = arith.constant 0 : index
    %58 = memref.load %arg2[%c1_50, %c0_51] : memref<4x9xf32, #tpu.memory_space<smem>>
    %59 = vector.broadcast %58 : f32 to vector<16x16xf32>
    %60 = arith.mulf %57, %59 : vector<16x16xf32>
    %61 = arith.addf %55, %60 : vector<16x16xf32>
    %c0_52 = arith.constant 0 : index
    %c1_53 = arith.constant 1 : index
    %c0_54 = arith.constant 0 : index
    %c1_55 = arith.constant 1 : index
    %62 = vector.load %arg1[%c0_52, %c1_53, %c0_54, %c1_55] : memref<1x4x18x18xf32, #tpu.memory_space<vmem>>, vector<1x1x16x16xf32>
    %63 = vector.shape_cast %62 : vector<1x1x16x16xf32> to vector<16x16xf32>
    %c1_56 = arith.constant 1 : index
    %c1_57 = arith.constant 1 : index
    %64 = memref.load %arg2[%c1_56, %c1_57] : memref<4x9xf32, #tpu.memory_space<smem>>
    %65 = vector.broadcast %64 : f32 to vector<16x16xf32>
    %66 = arith.mulf %63, %65 : vector<16x16xf32>
    %67 = arith.addf %61, %66 : vector<16x16xf32>
    %c0_58 = arith.constant 0 : index
    %c1_59 = arith.constant 1 : index
    %c0_60 = arith.constant 0 : index
    %c2_61 = arith.constant 2 : index
    %68 = vector.load %arg1[%c0_58, %c1_59, %c0_60, %c2_61] : memref<1x4x18x18xf32, #tpu.memory_space<vmem>>, vector<1x1x16x16xf32>
    %69 = vector.shape_cast %68 : vector<1x1x16x16xf32> to vector<16x16xf32>
    %c1_62 = arith.constant 1 : index
    %c2_63 = arith.constant 2 : index
    %70 = memref.load %arg2[%c1_62, %c2_63] : memref<4x9xf32, #tpu.memory_space<smem>>
    %71 = vector.broadcast %70 : f32 to vector<16x16xf32>
    %72 = arith.mulf %69, %71 : vector<16x16xf32>
    %73 = arith.addf %67, %72 : vector<16x16xf32>
    %c0_64 = arith.constant 0 : index
    %c1_65 = arith.constant 1 : index
    %c1_66 = arith.constant 1 : index
    %c0_67 = arith.constant 0 : index
    %74 = vector.load %arg1[%c0_64, %c1_65, %c1_66, %c0_67] : memref<1x4x18x18xf32, #tpu.memory_space<vmem>>, vector<1x1x16x16xf32>
    %75 = vector.shape_cast %74 : vector<1x1x16x16xf32> to vector<16x16xf32>
    %c1_68 = arith.constant 1 : index
    %c3_69 = arith.constant 3 : index
    %76 = memref.load %arg2[%c1_68, %c3_69] : memref<4x9xf32, #tpu.memory_space<smem>>
    %77 = vector.broadcast %76 : f32 to vector<16x16xf32>
    %78 = arith.mulf %75, %77 : vector<16x16xf32>
    %79 = arith.addf %73, %78 : vector<16x16xf32>
    %c0_70 = arith.constant 0 : index
    %c1_71 = arith.constant 1 : index
    %c1_72 = arith.constant 1 : index
    %c1_73 = arith.constant 1 : index
    %80 = vector.load %arg1[%c0_70, %c1_71, %c1_72, %c1_73] : memref<1x4x18x18xf32, #tpu.memory_space<vmem>>, vector<1x1x16x16xf32>
    %81 = vector.shape_cast %80 : vector<1x1x16x16xf32> to vector<16x16xf32>
    %c1_74 = arith.constant 1 : index
    %c4_75 = arith.constant 4 : index
    %82 = memref.load %arg2[%c1_74, %c4_75] : memref<4x9xf32, #tpu.memory_space<smem>>
    %83 = vector.broadcast %82 : f32 to vector<16x16xf32>
    %84 = arith.mulf %81, %83 : vector<16x16xf32>
    %85 = arith.addf %79, %84 : vector<16x16xf32>
    %c0_76 = arith.constant 0 : index
    %c1_77 = arith.constant 1 : index
    %c1_78 = arith.constant 1 : index
    %c2_79 = arith.constant 2 : index
    %86 = vector.load %arg1[%c0_76, %c1_77, %c1_78, %c2_79] : memref<1x4x18x18xf32, #tpu.memory_space<vmem>>, vector<1x1x16x16xf32>
    %87 = vector.shape_cast %86 : vector<1x1x16x16xf32> to vector<16x16xf32>
    %c1_80 = arith.constant 1 : index
    %c5_81 = arith.constant 5 : index
    %88 = memref.load %arg2[%c1_80, %c5_81] : memref<4x9xf32, #tpu.memory_space<smem>>
    %89 = vector.broadcast %88 : f32 to vector<16x16xf32>
    %90 = arith.mulf %87, %89 : vector<16x16xf32>
    %91 = arith.addf %85, %90 : vector<16x16xf32>
    %c0_82 = arith.constant 0 : index
    %c1_83 = arith.constant 1 : index
    %c2_84 = arith.constant 2 : index
    %c0_85 = arith.constant 0 : index
    %92 = vector.load %arg1[%c0_82, %c1_83, %c2_84, %c0_85] : memref<1x4x18x18xf32, #tpu.memory_space<vmem>>, vector<1x1x16x16xf32>
    %93 = vector.shape_cast %92 : vector<1x1x16x16xf32> to vector<16x16xf32>
    %c1_86 = arith.constant 1 : index
    %c6_87 = arith.constant 6 : index
    %94 = memref.load %arg2[%c1_86, %c6_87] : memref<4x9xf32, #tpu.memory_space<smem>>
    %95 = vector.broadcast %94 : f32 to vector<16x16xf32>
    %96 = arith.mulf %93, %95 : vector<16x16xf32>
    %97 = arith.addf %91, %96 : vector<16x16xf32>
    %c0_88 = arith.constant 0 : index
    %c1_89 = arith.constant 1 : index
    %c2_90 = arith.constant 2 : index
    %c1_91 = arith.constant 1 : index
    %98 = vector.load %arg1[%c0_88, %c1_89, %c2_90, %c1_91] : memref<1x4x18x18xf32, #tpu.memory_space<vmem>>, vector<1x1x16x16xf32>
    %99 = vector.shape_cast %98 : vector<1x1x16x16xf32> to vector<16x16xf32>
    %c1_92 = arith.constant 1 : index
    %c7_93 = arith.constant 7 : index
    %100 = memref.load %arg2[%c1_92, %c7_93] : memref<4x9xf32, #tpu.memory_space<smem>>
    %101 = vector.broadcast %100 : f32 to vector<16x16xf32>
    %102 = arith.mulf %99, %101 : vector<16x16xf32>
    %103 = arith.addf %97, %102 : vector<16x16xf32>
    %c0_94 = arith.constant 0 : index
    %c1_95 = arith.constant 1 : index
    %c2_96 = arith.constant 2 : index
    %c2_97 = arith.constant 2 : index
    %104 = vector.load %arg1[%c0_94, %c1_95, %c2_96, %c2_97] : memref<1x4x18x18xf32, #tpu.memory_space<vmem>>, vector<1x1x16x16xf32>
    %105 = vector.shape_cast %104 : vector<1x1x16x16xf32> to vector<16x16xf32>
    %c1_98 = arith.constant 1 : index
    %c8_99 = arith.constant 8 : index
    %106 = memref.load %arg2[%c1_98, %c8_99] : memref<4x9xf32, #tpu.memory_space<smem>>
    %107 = vector.broadcast %106 : f32 to vector<16x16xf32>
    %108 = arith.mulf %105, %107 : vector<16x16xf32>
    %109 = arith.addf %103, %108 : vector<16x16xf32>
    %cst_100 = arith.constant 0.000000e+00 : f32
    %110 = vector.broadcast %cst_100 : f32 to vector<16x16xf32>
    %c0_101 = arith.constant 0 : index
    %c2_102 = arith.constant 2 : index
    %c0_103 = arith.constant 0 : index
    %c0_104 = arith.constant 0 : index
    %111 = vector.load %arg1[%c0_101, %c2_102, %c0_103, %c0_104] : memref<1x4x18x18xf32, #tpu.memory_space<vmem>>, vector<1x1x16x16xf32>
    %112 = vector.shape_cast %111 : vector<1x1x16x16xf32> to vector<16x16xf32>
    %c2_105 = arith.constant 2 : index
    %c0_106 = arith.constant 0 : index
    %113 = memref.load %arg2[%c2_105, %c0_106] : memref<4x9xf32, #tpu.memory_space<smem>>
    %114 = vector.broadcast %113 : f32 to vector<16x16xf32>
    %115 = arith.mulf %112, %114 : vector<16x16xf32>
    %116 = arith.addf %110, %115 : vector<16x16xf32>
    %c0_107 = arith.constant 0 : index
    %c2_108 = arith.constant 2 : index
    %c0_109 = arith.constant 0 : index
    %c1_110 = arith.constant 1 : index
    %117 = vector.load %arg1[%c0_107, %c2_108, %c0_109, %c1_110] : memref<1x4x18x18xf32, #tpu.memory_space<vmem>>, vector<1x1x16x16xf32>
    %118 = vector.shape_cast %117 : vector<1x1x16x16xf32> to vector<16x16xf32>
    %c2_111 = arith.constant 2 : index
    %c1_112 = arith.constant 1 : index
    %119 = memref.load %arg2[%c2_111, %c1_112] : memref<4x9xf32, #tpu.memory_space<smem>>
    %120 = vector.broadcast %119 : f32 to vector<16x16xf32>
    %121 = arith.mulf %118, %120 : vector<16x16xf32>
    %122 = arith.addf %116, %121 : vector<16x16xf32>
    %c0_113 = arith.constant 0 : index
    %c2_114 = arith.constant 2 : index
    %c0_115 = arith.constant 0 : index
    %c2_116 = arith.constant 2 : index
    %123 = vector.load %arg1[%c0_113, %c2_114, %c0_115, %c2_116] : memref<1x4x18x18xf32, #tpu.memory_space<vmem>>, vector<1x1x16x16xf32>
    %124 = vector.shape_cast %123 : vector<1x1x16x16xf32> to vector<16x16xf32>
    %c2_117 = arith.constant 2 : index
    %c2_118 = arith.constant 2 : index
    %125 = memref.load %arg2[%c2_117, %c2_118] : memref<4x9xf32, #tpu.memory_space<smem>>
    %126 = vector.broadcast %125 : f32 to vector<16x16xf32>
    %127 = arith.mulf %124, %126 : vector<16x16xf32>
    %128 = arith.addf %122, %127 : vector<16x16xf32>
    %c0_119 = arith.constant 0 : index
    %c2_120 = arith.constant 2 : index
    %c1_121 = arith.constant 1 : index
    %c0_122 = arith.constant 0 : index
    %129 = vector.load %arg1[%c0_119, %c2_120, %c1_121, %c0_122] : memref<1x4x18x18xf32, #tpu.memory_space<vmem>>, vector<1x1x16x16xf32>
    %130 = vector.shape_cast %129 : vector<1x1x16x16xf32> to vector<16x16xf32>
    %c2_123 = arith.constant 2 : index
    %c3_124 = arith.constant 3 : index
    %131 = memref.load %arg2[%c2_123, %c3_124] : memref<4x9xf32, #tpu.memory_space<smem>>
    %132 = vector.broadcast %131 : f32 to vector<16x16xf32>
    %133 = arith.mulf %130, %132 : vector<16x16xf32>
    %134 = arith.addf %128, %133 : vector<16x16xf32>
    %c0_125 = arith.constant 0 : index
    %c2_126 = arith.constant 2 : index
    %c1_127 = arith.constant 1 : index
    %c1_128 = arith.constant 1 : index
    %135 = vector.load %arg1[%c0_125, %c2_126, %c1_127, %c1_128] : memref<1x4x18x18xf32, #tpu.memory_space<vmem>>, vector<1x1x16x16xf32>
    %136 = vector.shape_cast %135 : vector<1x1x16x16xf32> to vector<16x16xf32>
    %c2_129 = arith.constant 2 : index
    %c4_130 = arith.constant 4 : index
    %137 = memref.load %arg2[%c2_129, %c4_130] : memref<4x9xf32, #tpu.memory_space<smem>>
    %138 = vector.broadcast %137 : f32 to vector<16x16xf32>
    %139 = arith.mulf %136, %138 : vector<16x16xf32>
    %140 = arith.addf %134, %139 : vector<16x16xf32>
    %c0_131 = arith.constant 0 : index
    %c2_132 = arith.constant 2 : index
    %c1_133 = arith.constant 1 : index
    %c2_134 = arith.constant 2 : index
    %141 = vector.load %arg1[%c0_131, %c2_132, %c1_133, %c2_134] : memref<1x4x18x18xf32, #tpu.memory_space<vmem>>, vector<1x1x16x16xf32>
    %142 = vector.shape_cast %141 : vector<1x1x16x16xf32> to vector<16x16xf32>
    %c2_135 = arith.constant 2 : index
    %c5_136 = arith.constant 5 : index
    %143 = memref.load %arg2[%c2_135, %c5_136] : memref<4x9xf32, #tpu.memory_space<smem>>
    %144 = vector.broadcast %143 : f32 to vector<16x16xf32>
    %145 = arith.mulf %142, %144 : vector<16x16xf32>
    %146 = arith.addf %140, %145 : vector<16x16xf32>
    %c0_137 = arith.constant 0 : index
    %c2_138 = arith.constant 2 : index
    %c2_139 = arith.constant 2 : index
    %c0_140 = arith.constant 0 : index
    %147 = vector.load %arg1[%c0_137, %c2_138, %c2_139, %c0_140] : memref<1x4x18x18xf32, #tpu.memory_space<vmem>>, vector<1x1x16x16xf32>
    %148 = vector.shape_cast %147 : vector<1x1x16x16xf32> to vector<16x16xf32>
    %c2_141 = arith.constant 2 : index
    %c6_142 = arith.constant 6 : index
    %149 = memref.load %arg2[%c2_141, %c6_142] : memref<4x9xf32, #tpu.memory_space<smem>>
    %150 = vector.broadcast %149 : f32 to vector<16x16xf32>
    %151 = arith.mulf %148, %150 : vector<16x16xf32>
    %152 = arith.addf %146, %151 : vector<16x16xf32>
    %c0_143 = arith.constant 0 : index
    %c2_144 = arith.constant 2 : index
    %c2_145 = arith.constant 2 : index
    %c1_146 = arith.constant 1 : index
    %153 = vector.load %arg1[%c0_143, %c2_144, %c2_145, %c1_146] : memref<1x4x18x18xf32, #tpu.memory_space<vmem>>, vector<1x1x16x16xf32>
    %154 = vector.shape_cast %153 : vector<1x1x16x16xf32> to vector<16x16xf32>
    %c2_147 = arith.constant 2 : index
    %c7_148 = arith.constant 7 : index
    %155 = memref.load %arg2[%c2_147, %c7_148] : memref<4x9xf32, #tpu.memory_space<smem>>
    %156 = vector.broadcast %155 : f32 to vector<16x16xf32>
    %157 = arith.mulf %154, %156 : vector<16x16xf32>
    %158 = arith.addf %152, %157 : vector<16x16xf32>
    %c0_149 = arith.constant 0 : index
    %c2_150 = arith.constant 2 : index
    %c2_151 = arith.constant 2 : index
    %c2_152 = arith.constant 2 : index
    %159 = vector.load %arg1[%c0_149, %c2_150, %c2_151, %c2_152] : memref<1x4x18x18xf32, #tpu.memory_space<vmem>>, vector<1x1x16x16xf32>
    %160 = vector.shape_cast %159 : vector<1x1x16x16xf32> to vector<16x16xf32>
    %c2_153 = arith.constant 2 : index
    %c8_154 = arith.constant 8 : index
    %161 = memref.load %arg2[%c2_153, %c8_154] : memref<4x9xf32, #tpu.memory_space<smem>>
    %162 = vector.broadcast %161 : f32 to vector<16x16xf32>
    %163 = arith.mulf %160, %162 : vector<16x16xf32>
    %164 = arith.addf %158, %163 : vector<16x16xf32>
    %cst_155 = arith.constant 0.000000e+00 : f32
    %165 = vector.broadcast %cst_155 : f32 to vector<16x16xf32>
    %c0_156 = arith.constant 0 : index
    %c3_157 = arith.constant 3 : index
    %c0_158 = arith.constant 0 : index
    %c0_159 = arith.constant 0 : index
    %166 = vector.load %arg1[%c0_156, %c3_157, %c0_158, %c0_159] : memref<1x4x18x18xf32, #tpu.memory_space<vmem>>, vector<1x1x16x16xf32>
    %167 = vector.shape_cast %166 : vector<1x1x16x16xf32> to vector<16x16xf32>
    %c3_160 = arith.constant 3 : index
    %c0_161 = arith.constant 0 : index
    %168 = memref.load %arg2[%c3_160, %c0_161] : memref<4x9xf32, #tpu.memory_space<smem>>
    %169 = vector.broadcast %168 : f32 to vector<16x16xf32>
    %170 = arith.mulf %167, %169 : vector<16x16xf32>
    %171 = arith.addf %165, %170 : vector<16x16xf32>
    %c0_162 = arith.constant 0 : index
    %c3_163 = arith.constant 3 : index
    %c0_164 = arith.constant 0 : index
    %c1_165 = arith.constant 1 : index
    %172 = vector.load %arg1[%c0_162, %c3_163, %c0_164, %c1_165] : memref<1x4x18x18xf32, #tpu.memory_space<vmem>>, vector<1x1x16x16xf32>
    %173 = vector.shape_cast %172 : vector<1x1x16x16xf32> to vector<16x16xf32>
    %c3_166 = arith.constant 3 : index
    %c1_167 = arith.constant 1 : index
    %174 = memref.load %arg2[%c3_166, %c1_167] : memref<4x9xf32, #tpu.memory_space<smem>>
    %175 = vector.broadcast %174 : f32 to vector<16x16xf32>
    %176 = arith.mulf %173, %175 : vector<16x16xf32>
    %177 = arith.addf %171, %176 : vector<16x16xf32>
    %c0_168 = arith.constant 0 : index
    %c3_169 = arith.constant 3 : index
    %c0_170 = arith.constant 0 : index
    %c2_171 = arith.constant 2 : index
    %178 = vector.load %arg1[%c0_168, %c3_169, %c0_170, %c2_171] : memref<1x4x18x18xf32, #tpu.memory_space<vmem>>, vector<1x1x16x16xf32>
    %179 = vector.shape_cast %178 : vector<1x1x16x16xf32> to vector<16x16xf32>
    %c3_172 = arith.constant 3 : index
    %c2_173 = arith.constant 2 : index
    %180 = memref.load %arg2[%c3_172, %c2_173] : memref<4x9xf32, #tpu.memory_space<smem>>
    %181 = vector.broadcast %180 : f32 to vector<16x16xf32>
    %182 = arith.mulf %179, %181 : vector<16x16xf32>
    %183 = arith.addf %177, %182 : vector<16x16xf32>
    %c0_174 = arith.constant 0 : index
    %c3_175 = arith.constant 3 : index
    %c1_176 = arith.constant 1 : index
    %c0_177 = arith.constant 0 : index
    %184 = vector.load %arg1[%c0_174, %c3_175, %c1_176, %c0_177] : memref<1x4x18x18xf32, #tpu.memory_space<vmem>>, vector<1x1x16x16xf32>
    %185 = vector.shape_cast %184 : vector<1x1x16x16xf32> to vector<16x16xf32>
    %c3_178 = arith.constant 3 : index
    %c3_179 = arith.constant 3 : index
    %186 = memref.load %arg2[%c3_178, %c3_179] : memref<4x9xf32, #tpu.memory_space<smem>>
    %187 = vector.broadcast %186 : f32 to vector<16x16xf32>
    %188 = arith.mulf %185, %187 : vector<16x16xf32>
    %189 = arith.addf %183, %188 : vector<16x16xf32>
    %c0_180 = arith.constant 0 : index
    %c3_181 = arith.constant 3 : index
    %c1_182 = arith.constant 1 : index
    %c1_183 = arith.constant 1 : index
    %190 = vector.load %arg1[%c0_180, %c3_181, %c1_182, %c1_183] : memref<1x4x18x18xf32, #tpu.memory_space<vmem>>, vector<1x1x16x16xf32>
    %191 = vector.shape_cast %190 : vector<1x1x16x16xf32> to vector<16x16xf32>
    %c3_184 = arith.constant 3 : index
    %c4_185 = arith.constant 4 : index
    %192 = memref.load %arg2[%c3_184, %c4_185] : memref<4x9xf32, #tpu.memory_space<smem>>
    %193 = vector.broadcast %192 : f32 to vector<16x16xf32>
    %194 = arith.mulf %191, %193 : vector<16x16xf32>
    %195 = arith.addf %189, %194 : vector<16x16xf32>
    %c0_186 = arith.constant 0 : index
    %c3_187 = arith.constant 3 : index
    %c1_188 = arith.constant 1 : index
    %c2_189 = arith.constant 2 : index
    %196 = vector.load %arg1[%c0_186, %c3_187, %c1_188, %c2_189] : memref<1x4x18x18xf32, #tpu.memory_space<vmem>>, vector<1x1x16x16xf32>
    %197 = vector.shape_cast %196 : vector<1x1x16x16xf32> to vector<16x16xf32>
    %c3_190 = arith.constant 3 : index
    %c5_191 = arith.constant 5 : index
    %198 = memref.load %arg2[%c3_190, %c5_191] : memref<4x9xf32, #tpu.memory_space<smem>>
    %199 = vector.broadcast %198 : f32 to vector<16x16xf32>
    %200 = arith.mulf %197, %199 : vector<16x16xf32>
    %201 = arith.addf %195, %200 : vector<16x16xf32>
    %c0_192 = arith.constant 0 : index
    %c3_193 = arith.constant 3 : index
    %c2_194 = arith.constant 2 : index
    %c0_195 = arith.constant 0 : index
    %202 = vector.load %arg1[%c0_192, %c3_193, %c2_194, %c0_195] : memref<1x4x18x18xf32, #tpu.memory_space<vmem>>, vector<1x1x16x16xf32>
    %203 = vector.shape_cast %202 : vector<1x1x16x16xf32> to vector<16x16xf32>
    %c3_196 = arith.constant 3 : index
    %c6_197 = arith.constant 6 : index
    %204 = memref.load %arg2[%c3_196, %c6_197] : memref<4x9xf32, #tpu.memory_space<smem>>
    %205 = vector.broadcast %204 : f32 to vector<16x16xf32>
    %206 = arith.mulf %203, %205 : vector<16x16xf32>
    %207 = arith.addf %201, %206 : vector<16x16xf32>
    %c0_198 = arith.constant 0 : index
    %c3_199 = arith.constant 3 : index
    %c2_200 = arith.constant 2 : index
    %c1_201 = arith.constant 1 : index
    %208 = vector.load %arg1[%c0_198, %c3_199, %c2_200, %c1_201] : memref<1x4x18x18xf32, #tpu.memory_space<vmem>>, vector<1x1x16x16xf32>
    %209 = vector.shape_cast %208 : vector<1x1x16x16xf32> to vector<16x16xf32>
    %c3_202 = arith.constant 3 : index
    %c7_203 = arith.constant 7 : index
    %210 = memref.load %arg2[%c3_202, %c7_203] : memref<4x9xf32, #tpu.memory_space<smem>>
    %211 = vector.broadcast %210 : f32 to vector<16x16xf32>
    %212 = arith.mulf %209, %211 : vector<16x16xf32>
    %213 = arith.addf %207, %212 : vector<16x16xf32>
    %c0_204 = arith.constant 0 : index
    %c3_205 = arith.constant 3 : index
    %c2_206 = arith.constant 2 : index
    %c2_207 = arith.constant 2 : index
    %214 = vector.load %arg1[%c0_204, %c3_205, %c2_206, %c2_207] : memref<1x4x18x18xf32, #tpu.memory_space<vmem>>, vector<1x1x16x16xf32>
    %215 = vector.shape_cast %214 : vector<1x1x16x16xf32> to vector<16x16xf32>
    %c3_208 = arith.constant 3 : index
    %c8_209 = arith.constant 8 : index
    %216 = memref.load %arg2[%c3_208, %c8_209] : memref<4x9xf32, #tpu.memory_space<smem>>
    %217 = vector.broadcast %216 : f32 to vector<16x16xf32>
    %218 = arith.mulf %215, %217 : vector<16x16xf32>
    %219 = arith.addf %213, %218 : vector<16x16xf32>
    %c0_210 = arith.constant 0 : index
    %c0_211 = arith.constant 0 : index
    %220 = memref.load %arg3[%c0_210, %c0_211] : memref<8x4xf32, #tpu.memory_space<smem>>
    %221 = vector.broadcast %220 : f32 to vector<16x16xf32>
    %222 = arith.mulf %54, %221 : vector<16x16xf32>
    %c0_212 = arith.constant 0 : index
    %c1_213 = arith.constant 1 : index
    %223 = memref.load %arg3[%c0_212, %c1_213] : memref<8x4xf32, #tpu.memory_space<smem>>
    %224 = vector.broadcast %223 : f32 to vector<16x16xf32>
    %225 = arith.mulf %109, %224 : vector<16x16xf32>
    %226 = arith.addf %222, %225 : vector<16x16xf32>
    %c0_214 = arith.constant 0 : index
    %c2_215 = arith.constant 2 : index
    %227 = memref.load %arg3[%c0_214, %c2_215] : memref<8x4xf32, #tpu.memory_space<smem>>
    %228 = vector.broadcast %227 : f32 to vector<16x16xf32>
    %229 = arith.mulf %164, %228 : vector<16x16xf32>
    %230 = arith.addf %226, %229 : vector<16x16xf32>
    %c0_216 = arith.constant 0 : index
    %c3_217 = arith.constant 3 : index
    %231 = memref.load %arg3[%c0_216, %c3_217] : memref<8x4xf32, #tpu.memory_space<smem>>
    %232 = vector.broadcast %231 : f32 to vector<16x16xf32>
    %233 = arith.mulf %219, %232 : vector<16x16xf32>
    %234 = arith.addf %230, %233 : vector<16x16xf32>
    %c0_218 = arith.constant 0 : index
    %c0_219 = arith.constant 0 : index
    %c0_220 = arith.constant 0 : index
    %c0_221 = arith.constant 0 : index
    %235 = vector.load %arg4[%c0_218, %c0_219, %c0_220, %c0_221] : memref<1x8x16x16xf32, #tpu.memory_space<vmem>>, vector<1x1x16x16xf32>
    %236 = vector.shape_cast %235 : vector<1x1x16x16xf32> to vector<16x16xf32>
    %237 = vector.shape_cast %234 : vector<16x16xf32> to vector<1x1x16x16xf32>
    tpu.vector_store %arg4[%c0_218, %c0_219, %c0_220, %c0_221], %237 {strides = array<i32>} : memref<1x8x16x16xf32, #tpu.memory_space<vmem>>, vector<1x1x16x16xf32>,
    %c1_222 = arith.constant 1 : index
    %c0_223 = arith.constant 0 : index
    %238 = memref.load %arg3[%c1_222, %c0_223] : memref<8x4xf32, #tpu.memory_space<smem>>
    %239 = vector.broadcast %238 : f32 to vector<16x16xf32>
    %240 = arith.mulf %54, %239 : vector<16x16xf32>
    %c1_224 = arith.constant 1 : index
    %c1_225 = arith.constant 1 : index
    %241 = memref.load %arg3[%c1_224, %c1_225] : memref<8x4xf32, #tpu.memory_space<smem>>
    %242 = vector.broadcast %241 : f32 to vector<16x16xf32>
    %243 = arith.mulf %109, %242 : vector<16x16xf32>
    %244 = arith.addf %240, %243 : vector<16x16xf32>
    %c1_226 = arith.constant 1 : index
    %c2_227 = arith.constant 2 : index
    %245 = memref.load %arg3[%c1_226, %c2_227] : memref<8x4xf32, #tpu.memory_space<smem>>
    %246 = vector.broadcast %245 : f32 to vector<16x16xf32>
    %247 = arith.mulf %164, %246 : vector<16x16xf32>
    %248 = arith.addf %244, %247 : vector<16x16xf32>
    %c1_228 = arith.constant 1 : index
    %c3_229 = arith.constant 3 : index
    %249 = memref.load %arg3[%c1_228, %c3_229] : memref<8x4xf32, #tpu.memory_space<smem>>
    %250 = vector.broadcast %249 : f32 to vector<16x16xf32>
    %251 = arith.mulf %219, %250 : vector<16x16xf32>
    %252 = arith.addf %248, %251 : vector<16x16xf32>
    %c0_230 = arith.constant 0 : index
    %c1_231 = arith.constant 1 : index
    %c0_232 = arith.constant 0 : index
    %c0_233 = arith.constant 0 : index
    %253 = vector.load %arg4[%c0_230, %c1_231, %c0_232, %c0_233] : memref<1x8x16x16xf32, #tpu.memory_space<vmem>>, vector<1x1x16x16xf32>
    %254 = vector.shape_cast %253 : vector<1x1x16x16xf32> to vector<16x16xf32>
    %255 = vector.shape_cast %252 : vector<16x16xf32> to vector<1x1x16x16xf32>
    tpu.vector_store %arg4[%c0_230, %c1_231, %c0_232, %c0_233], %255 {strides = array<i32>} : memref<1x8x16x16xf32, #tpu.memory_space<vmem>>, vector<1x1x16x16xf32>,
    %c2_234 = arith.constant 2 : index
    %c0_235 = arith.constant 0 : index
    %256 = memref.load %arg3[%c2_234, %c0_235] : memref<8x4xf32, #tpu.memory_space<smem>>
    %257 = vector.broadcast %256 : f32 to vector<16x16xf32>
    %258 = arith.mulf %54, %257 : vector<16x16xf32>
    %c2_236 = arith.constant 2 : index
    %c1_237 = arith.constant 1 : index
    %259 = memref.load %arg3[%c2_236, %c1_237] : memref<8x4xf32, #tpu.memory_space<smem>>
    %260 = vector.broadcast %259 : f32 to vector<16x16xf32>
    %261 = arith.mulf %109, %260 : vector<16x16xf32>
    %262 = arith.addf %258, %261 : vector<16x16xf32>
    %c2_238 = arith.constant 2 : index
    %c2_239 = arith.constant 2 : index
    %263 = memref.load %arg3[%c2_238, %c2_239] : memref<8x4xf32, #tpu.memory_space<smem>>
    %264 = vector.broadcast %263 : f32 to vector<16x16xf32>
    %265 = arith.mulf %164, %264 : vector<16x16xf32>
    %266 = arith.addf %262, %265 : vector<16x16xf32>
    %c2_240 = arith.constant 2 : index
    %c3_241 = arith.constant 3 : index
    %267 = memref.load %arg3[%c2_240, %c3_241] : memref<8x4xf32, #tpu.memory_space<smem>>
    %268 = vector.broadcast %267 : f32 to vector<16x16xf32>
    %269 = arith.mulf %219, %268 : vector<16x16xf32>
    %270 = arith.addf %266, %269 : vector<16x16xf32>
    %c0_242 = arith.constant 0 : index
    %c2_243 = arith.constant 2 : index
    %c0_244 = arith.constant 0 : index
    %c0_245 = arith.constant 0 : index
    %271 = vector.load %arg4[%c0_242, %c2_243, %c0_244, %c0_245] : memref<1x8x16x16xf32, #tpu.memory_space<vmem>>, vector<1x1x16x16xf32>
    %272 = vector.shape_cast %271 : vector<1x1x16x16xf32> to vector<16x16xf32>
    %273 = vector.shape_cast %270 : vector<16x16xf32> to vector<1x1x16x16xf32>
    tpu.vector_store %arg4[%c0_242, %c2_243, %c0_244, %c0_245], %273 {strides = array<i32>} : memref<1x8x16x16xf32, #tpu.memory_space<vmem>>, vector<1x1x16x16xf32>,
    %c3_246 = arith.constant 3 : index
    %c0_247 = arith.constant 0 : index
    %274 = memref.load %arg3[%c3_246, %c0_247] : memref<8x4xf32, #tpu.memory_space<smem>>
    %275 = vector.broadcast %274 : f32 to vector<16x16xf32>
    %276 = arith.mulf %54, %275 : vector<16x16xf32>
    %c3_248 = arith.constant 3 : index
    %c1_249 = arith.constant 1 : index
    %277 = memref.load %arg3[%c3_248, %c1_249] : memref<8x4xf32, #tpu.memory_space<smem>>
    %278 = vector.broadcast %277 : f32 to vector<16x16xf32>
    %279 = arith.mulf %109, %278 : vector<16x16xf32>
    %280 = arith.addf %276, %279 : vector<16x16xf32>
    %c3_250 = arith.constant 3 : index
    %c2_251 = arith.constant 2 : index
    %281 = memref.load %arg3[%c3_250, %c2_251] : memref<8x4xf32, #tpu.memory_space<smem>>
    %282 = vector.broadcast %281 : f32 to vector<16x16xf32>
    %283 = arith.mulf %164, %282 : vector<16x16xf32>
    %284 = arith.addf %280, %283 : vector<16x16xf32>
    %c3_252 = arith.constant 3 : index
    %c3_253 = arith.constant 3 : index
    %285 = memref.load %arg3[%c3_252, %c3_253] : memref<8x4xf32, #tpu.memory_space<smem>>
    %286 = vector.broadcast %285 : f32 to vector<16x16xf32>
    %287 = arith.mulf %219, %286 : vector<16x16xf32>
    %288 = arith.addf %284, %287 : vector<16x16xf32>
    %c0_254 = arith.constant 0 : index
    %c3_255 = arith.constant 3 : index
    %c0_256 = arith.constant 0 : index
    %c0_257 = arith.constant 0 : index
    %289 = vector.load %arg4[%c0_254, %c3_255, %c0_256, %c0_257] : memref<1x8x16x16xf32, #tpu.memory_space<vmem>>, vector<1x1x16x16xf32>
    %290 = vector.shape_cast %289 : vector<1x1x16x16xf32> to vector<16x16xf32>
    %291 = vector.shape_cast %288 : vector<16x16xf32> to vector<1x1x16x16xf32>
    tpu.vector_store %arg4[%c0_254, %c3_255, %c0_256, %c0_257], %291 {strides = array<i32>} : memref<1x8x16x16xf32, #tpu.memory_space<vmem>>, vector<1x1x16x16xf32>,
    %c4_258 = arith.constant 4 : index
    %c0_259 = arith.constant 0 : index
    %292 = memref.load %arg3[%c4_258, %c0_259] : memref<8x4xf32, #tpu.memory_space<smem>>
    %293 = vector.broadcast %292 : f32 to vector<16x16xf32>
    %294 = arith.mulf %54, %293 : vector<16x16xf32>
    %c4_260 = arith.constant 4 : index
    %c1_261 = arith.constant 1 : index
    %295 = memref.load %arg3[%c4_260, %c1_261] : memref<8x4xf32, #tpu.memory_space<smem>>
    %296 = vector.broadcast %295 : f32 to vector<16x16xf32>
    %297 = arith.mulf %109, %296 : vector<16x16xf32>
    %298 = arith.addf %294, %297 : vector<16x16xf32>
    %c4_262 = arith.constant 4 : index
    %c2_263 = arith.constant 2 : index
    %299 = memref.load %arg3[%c4_262, %c2_263] : memref<8x4xf32, #tpu.memory_space<smem>>
    %300 = vector.broadcast %299 : f32 to vector<16x16xf32>
    %301 = arith.mulf %164, %300 : vector<16x16xf32>
    %302 = arith.addf %298, %301 : vector<16x16xf32>
    %c4_264 = arith.constant 4 : index
    %c3_265 = arith.constant 3 : index
    %303 = memref.load %arg3[%c4_264, %c3_265] : memref<8x4xf32, #tpu.memory_space<smem>>
    %304 = vector.broadcast %303 : f32 to vector<16x16xf32>
    %305 = arith.mulf %219, %304 : vector<16x16xf32>
    %306 = arith.addf %302, %305 : vector<16x16xf32>
    %c0_266 = arith.constant 0 : index
    %c4_267 = arith.constant 4 : index
    %c0_268 = arith.constant 0 : index
    %c0_269 = arith.constant 0 : index
    %307 = vector.load %arg4[%c0_266, %c4_267, %c0_268, %c0_269] : memref<1x8x16x16xf32, #tpu.memory_space<vmem>>, vector<1x1x16x16xf32>
    %308 = vector.shape_cast %307 : vector<1x1x16x16xf32> to vector<16x16xf32>
    %309 = vector.shape_cast %306 : vector<16x16xf32> to vector<1x1x16x16xf32>
    tpu.vector_store %arg4[%c0_266, %c4_267, %c0_268, %c0_269], %309 {strides = array<i32>} : memref<1x8x16x16xf32, #tpu.memory_space<vmem>>, vector<1x1x16x16xf32>,
    %c5_270 = arith.constant 5 : index
    %c0_271 = arith.constant 0 : index
    %310 = memref.load %arg3[%c5_270, %c0_271] : memref<8x4xf32, #tpu.memory_space<smem>>
    %311 = vector.broadcast %310 : f32 to vector<16x16xf32>
    %312 = arith.mulf %54, %311 : vector<16x16xf32>
    %c5_272 = arith.constant 5 : index
    %c1_273 = arith.constant 1 : index
    %313 = memref.load %arg3[%c5_272, %c1_273] : memref<8x4xf32, #tpu.memory_space<smem>>
    %314 = vector.broadcast %313 : f32 to vector<16x16xf32>
    %315 = arith.mulf %109, %314 : vector<16x16xf32>
    %316 = arith.addf %312, %315 : vector<16x16xf32>
    %c5_274 = arith.constant 5 : index
    %c2_275 = arith.constant 2 : index
    %317 = memref.load %arg3[%c5_274, %c2_275] : memref<8x4xf32, #tpu.memory_space<smem>>
    %318 = vector.broadcast %317 : f32 to vector<16x16xf32>
    %319 = arith.mulf %164, %318 : vector<16x16xf32>
    %320 = arith.addf %316, %319 : vector<16x16xf32>
    %c5_276 = arith.constant 5 : index
    %c3_277 = arith.constant 3 : index
    %321 = memref.load %arg3[%c5_276, %c3_277] : memref<8x4xf32, #tpu.memory_space<smem>>
    %322 = vector.broadcast %321 : f32 to vector<16x16xf32>
    %323 = arith.mulf %219, %322 : vector<16x16xf32>
    %324 = arith.addf %320, %323 : vector<16x16xf32>
    %c0_278 = arith.constant 0 : index
    %c5_279 = arith.constant 5 : index
    %c0_280 = arith.constant 0 : index
    %c0_281 = arith.constant 0 : index
    %325 = vector.load %arg4[%c0_278, %c5_279, %c0_280, %c0_281] : memref<1x8x16x16xf32, #tpu.memory_space<vmem>>, vector<1x1x16x16xf32>
    %326 = vector.shape_cast %325 : vector<1x1x16x16xf32> to vector<16x16xf32>
    %327 = vector.shape_cast %324 : vector<16x16xf32> to vector<1x1x16x16xf32>
    tpu.vector_store %arg4[%c0_278, %c5_279, %c0_280, %c0_281], %327 {strides = array<i32>} : memref<1x8x16x16xf32, #tpu.memory_space<vmem>>, vector<1x1x16x16xf32>,
    %c6_282 = arith.constant 6 : index
    %c0_283 = arith.constant 0 : index
    %328 = memref.load %arg3[%c6_282, %c0_283] : memref<8x4xf32, #tpu.memory_space<smem>>
    %329 = vector.broadcast %328 : f32 to vector<16x16xf32>
    %330 = arith.mulf %54, %329 : vector<16x16xf32>
    %c6_284 = arith.constant 6 : index
    %c1_285 = arith.constant 1 : index
    %331 = memref.load %arg3[%c6_284, %c1_285] : memref<8x4xf32, #tpu.memory_space<smem>>
    %332 = vector.broadcast %331 : f32 to vector<16x16xf32>
    %333 = arith.mulf %109, %332 : vector<16x16xf32>
    %334 = arith.addf %330, %333 : vector<16x16xf32>
    %c6_286 = arith.constant 6 : index
    %c2_287 = arith.constant 2 : index
    %335 = memref.load %arg3[%c6_286, %c2_287] : memref<8x4xf32, #tpu.memory_space<smem>>
    %336 = vector.broadcast %335 : f32 to vector<16x16xf32>
    %337 = arith.mulf %164, %336 : vector<16x16xf32>
    %338 = arith.addf %334, %337 : vector<16x16xf32>
    %c6_288 = arith.constant 6 : index
    %c3_289 = arith.constant 3 : index
    %339 = memref.load %arg3[%c6_288, %c3_289] : memref<8x4xf32, #tpu.memory_space<smem>>
    %340 = vector.broadcast %339 : f32 to vector<16x16xf32>
    %341 = arith.mulf %219, %340 : vector<16x16xf32>
    %342 = arith.addf %338, %341 : vector<16x16xf32>
    %c0_290 = arith.constant 0 : index
    %c6_291 = arith.constant 6 : index
    %c0_292 = arith.constant 0 : index
    %c0_293 = arith.constant 0 : index
    %343 = vector.load %arg4[%c0_290, %c6_291, %c0_292, %c0_293] : memref<1x8x16x16xf32, #tpu.memory_space<vmem>>, vector<1x1x16x16xf32>
    %344 = vector.shape_cast %343 : vector<1x1x16x16xf32> to vector<16x16xf32>
    %345 = vector.shape_cast %342 : vector<16x16xf32> to vector<1x1x16x16xf32>
    tpu.vector_store %arg4[%c0_290, %c6_291, %c0_292, %c0_293], %345 {strides = array<i32>} : memref<1x8x16x16xf32, #tpu.memory_space<vmem>>, vector<1x1x16x16xf32>,
    %c7_294 = arith.constant 7 : index
    %c0_295 = arith.constant 0 : index
    %346 = memref.load %arg3[%c7_294, %c0_295] : memref<8x4xf32, #tpu.memory_space<smem>>
    %347 = vector.broadcast %346 : f32 to vector<16x16xf32>
    %348 = arith.mulf %54, %347 : vector<16x16xf32>
    %c7_296 = arith.constant 7 : index
    %c1_297 = arith.constant 1 : index
    %349 = memref.load %arg3[%c7_296, %c1_297] : memref<8x4xf32, #tpu.memory_space<smem>>
    %350 = vector.broadcast %349 : f32 to vector<16x16xf32>
    %351 = arith.mulf %109, %350 : vector<16x16xf32>
    %352 = arith.addf %348, %351 : vector<16x16xf32>
    %c7_298 = arith.constant 7 : index
    %c2_299 = arith.constant 2 : index
    %353 = memref.load %arg3[%c7_298, %c2_299] : memref<8x4xf32, #tpu.memory_space<smem>>
    %354 = vector.broadcast %353 : f32 to vector<16x16xf32>
    %355 = arith.mulf %164, %354 : vector<16x16xf32>
    %356 = arith.addf %352, %355 : vector<16x16xf32>
    %c7_300 = arith.constant 7 : index
    %c3_301 = arith.constant 3 : index
    %357 = memref.load %arg3[%c7_300, %c3_301] : memref<8x4xf32, #tpu.memory_space<smem>>
    %358 = vector.broadcast %357 : f32 to vector<16x16xf32>
    %359 = arith.mulf %219, %358 : vector<16x16xf32>
    %360 = arith.addf %356, %359 : vector<16x16xf32>
    %c0_302 = arith.constant 0 : index
    %c7_303 = arith.constant 7 : index
    %c0_304 = arith.constant 0 : index
    %c0_305 = arith.constant 0 : index
    %361 = vector.load %arg4[%c0_302, %c7_303, %c0_304, %c0_305] : memref<1x8x16x16xf32, #tpu.memory_space<vmem>>, vector<1x1x16x16xf32>
    %362 = vector.shape_cast %361 : vector<1x1x16x16xf32> to vector<16x16xf32>
    %363 = vector.shape_cast %360 : vector<16x16xf32> to vector<1x1x16x16xf32>
    tpu.vector_store %arg4[%c0_302, %c7_303, %c0_304, %c0_305], %363 {strides = array<i32>} : memref<1x8x16x16xf32, #tpu.memory_space<vmem>>, vector<1x1x16x16xf32>,
    return
  }
  func.func @transform_0(%arg0: i32) -> (i32, i32, i32, i32) {
    %c0_i32 = arith.constant 0 : i32
    %c0_i32_0 = arith.constant 0 : i32
    %c0_i32_1 = arith.constant 0 : i32
    %c0_i32_2 = arith.constant 0 : i32
    return %arg0, %c0_i32, %c0_i32_0, %c0_i32_1 : i32, i32, i32, i32
  }
  func.func @transform_1(%arg0: i32) -> (i32, i32) {
    %c0_i32 = arith.constant 0 : i32
    %c0_i32_0 = arith.constant 0 : i32
    %c0_i32_1 = arith.constant 0 : i32
    return %c0_i32, %c0_i32_0 : i32, i32
  }
  func.func @transform_2(%arg0: i32) -> (i32, i32) {
    %c0_i32 = arith.constant 0 : i32
    %c0_i32_0 = arith.constant 0 : i32
    %c0_i32_1 = arith.constant 0 : i32
    return %c0_i32, %c0_i32_0 : i32, i32
  }
  func.func @transform_3(%arg0: i32) -> (i32, i32, i32, i32) {
    %c0_i32 = arith.constant 0 : i32
    %c0_i32_0 = arith.constant 0 : i32
    %c0_i32_1 = arith.constant 0 : i32
    %c0_i32_2 = arith.constant 0 : i32
    return %arg0, %c0_i32, %c0_i32_0, %c0_i32_1 : i32, i32, i32, i32
  }
}

</mosaic_0001>

<bundles_post_ra>
// kernel: tpu_custom_call.1
= control target key start
LH: loop header
LB: loop body
LE: loop exit
PB: predicated region body
PF: predicated region fallthrough
CT: control target
= control target key end

     0   :  { %s1801_s0 = inlined_call_operand.vmem [shape: f32[2,4,18,18], index: 0, kind: input, shape index: {}]   ;;  %s1802_s1 = inlined_call_operand.vmem [shape: f32[4,9], index: 1, kind: input, shape index: {}]   ;;  %s1803_s2 = inlined_call_operand.vmem [shape: f32[8,4], index: 2, kind: input, shape index: {}]   ;;  %s1804_s3 = inlined_call_operand.hbm [shape: f32[2,8,16,16], index: 3, kind: output, shape index: {}]  }
   0x1   :  { %1808 = sst [smem:[#allocation11_spill]] %s1801_s0 }
   0x2   :  { %1809 = sst [smem:[#allocation12_spill]] %s1802_s1 }
   0x3   :  { %1810 = sst [smem:[#allocation13_spill]] %s1803_s2 }
   0x4   :  { %8 = vsyncpa [#allocation4], 0 }
   0x5   :  { %9 = vsyncpa [#allocation6], 0 }
   0x6   :  { %10 = vsyncpa [#allocation3], 0 }
   0x7   :  { %12 = vsyncpa [#allocation3 + $0x1], 0  ;;  %s1235_s12 = smov 0   ;;  %s1237_s13 = smov 0  }
   0x8   :  { %s1239_s14 = smov 0   ;;  %s1241_s15 = smov 0  }
   0x9 LB: > { %s1256_s16 = sadd.s32 4294967295, %s1206_s15   ;;  %s929_s17 = sadd.s32 4294967294, %s1206_s15   ;;  %s1206_s15 = sphi %s1241_s15, %s1828_s15   ;;  %s1202_s14 = sphi %s1239_s14, %s1827_s14   ;;  %s1198_s13 = sphi %s1237_s13, %s1826_s13   ;;  %s1194_s12 = sphi %s1235_s12, %s1825_s12  }
   0xa   : > { %s1260_s18 = sadd.s32 1, %s1206_s15   ;;  %s93_s19 = sadd.s32 1, %s1202_s14 }
   0xb   : > { %s90_s20 = ssub.s32 %s1206_s15, %s1260_s18  ;;  %p103_p0 = scmp.ne.s32.totalorder %s1202_s14, %s1198_s13 }
   0xc   : > { %p91_p1 = scmp.eq.s32.totalorder %s90_s20, 0  ;;  %p104_p2 = scmp.eq.s32.totalorder %s1256_s16, 1 }
   0xd   : > { %p109_p3 = scmp.ne.s32.totalorder %s1198_s13, %s1194_s12  ;;  %p110_p4 = scmp.eq.s32.totalorder %s929_s17, 1 }
   0xe   : > { %s1271_s21 = scalar_select %p91_p1, %s1202_s14, %s93_s19  }
   0xf   : > { %p1273_p5 = por %p104_p2, %p103_p0  ;;  %p1277_p6 = por %p110_p4, %p109_p3 }
  0x10   : > { %p930_p7 = scmp.ge.s32.totalorder %s1206_s15, 1  ;;  %p117_p8 = scmp.lt.s32.totalorder %s1206_s15, 3 }
  0x11   : > { %s1811_s22 = scalar_select %p1273_p5, 1, 0 }
  0x12   : > { %s1812_s23 = scalar_select %p1277_p6, 1, 0 }
  0x13   : > { %p1805_p9 = scmp.eq.s32.totalorder %s1256_s16, 0  ;;  %p1284_p10 = pnand %p930_p7, %p117_p8 }
  0x14   : > { %s1814_s1 = sld [smem:[#allocation12_spill]] }
  0x15   : > { %s1813_s24 = scalar_select %p1284_p10, 1, 0 }
  0x16   : > { %p1054_p11 = pneg %p1284_p10  ;;  %s1815_s2 = sld [smem:[#allocation13_spill]] }
  0x18   : > { %p1298_p12 = pnand %p1805_p9, %p1054_p11 }
  0x1a   : > { %s130_s27 = sshll.u32 %s1814_s1, 4  ;;  %p1110_p0 = pneg %p1298_p12  ;;  %s131_s27 = int_to_ptr.vmem [resolvable:$true] %s130_s27 }
  0x1b   : > { %s1108_s5 = scalar_lea.vmem %s131_s27, 64  ;;  %p1116_p3 = scmp.lt.s32.totalorder %s131_s27, %s131_s27 }
  0x1c   : > { %s141_s30 = sshll.u32 %s1815_s2, 4  ;;  %p1109_p13 = scmp.ne.s32.totalorder %s131_s27, %s1108_s5  ;;  %s142_s30 = int_to_ptr.vmem [resolvable:$true] %s141_s30 }
  0x1d   : > { %p1117_p4 = scmp.lt.s32.totalorder %s1108_s5, %s1108_s5 }
  0x1e   : > { %p1111_p1 = pnand %p1110_p0, %p1109_p13 }
  0x1f   : > { %p1118_p7 = por %p1117_p4, %p1116_p3 }
  0x20   : > { %p1112_p2 = pneg %p1111_p1 }
  0x22   : > { %p1119_p8 = pnand %p1118_p7, %p1112_p2 }
  0x24   : > { %1122 = shalt.err (!%p1119_p8)
}
  0x25   : > { %s1208_s6 = smov [#allocation2]   ;;  %s1123_s7 = scalar_lea.vmem %s142_s30, 128 }
  0x26   : > { %1057 = dma.vmem_to_smem (!%p1298_p12), %s131_s27, 64, %s1208_s6, [#allocation4]  }
  0x27   : > { %p1124_p11 = scmp.ne.s32.totalorder %s142_s30, %s1123_s7  ;;  %p1131_p5 = scmp.lt.s32.totalorder %s142_s30, %s142_s30 }
  0x28   : > { %p1132_p10 = scmp.lt.s32.totalorder %s1123_s7, %s1123_s7 }
  0x29   : > { %p1126_p9 = pnand %p1124_p11, %p1110_p0 }
  0x2a   : > { %p1133_p13 = por %p1132_p10, %p1131_p5 }
  0x2b   : > { %p1127_p6 = pneg %p1126_p9 }
  0x2d   : > { %p1134_p1 = pnand %p1133_p13, %p1127_p6 }
  0x2f   : > { %1137 = shalt.err (!%p1134_p1)
}
  0x30   : > { %s1209_s8 = smov [#allocation5]   ;;  %p1817_p2 = scmp.ne.s32.totalorder %s1813_s24, 0 }
  0x31   : > { %1060 = dma.vmem_to_smem (!%p1298_p12), %s142_s30, 128, %s1209_s8, [#allocation6]  }
  0x32   : > { %162 = sbr.rel (%p1817_p2) target bundleno = 318 (0x13e), region = 32  ;;  %p1818_p3 = scmp.eq.s32.totalorder (!%p1817_p2), %s1256_s16, 0 }
  0x37   : > { %1181 = dma.done.wait (%p1818_p3), [#allocation4], 64   ;;  %p1819_p4 = pmov %p1818_p3 }
  0x38   : > { %p1820_p9 = pmov %p1818_p3 }
  0x39   : > { %1183 = vsyncadd (%p1819_p4), [#allocation4], 4294967232 }
  0x3a   : > { %1185 = dma.done.wait (%p1820_p9), [#allocation6], 128   ;;  %p1821_p5 = pmov %p1818_p3 }
  0x3c   : > { %1187 = vsyncadd (%p1821_p5), [#allocation6], 4294967168 }
  0x3d   : > { %172 = sfence }
  0x3e   : > { %p191_p6 = scmp.lt.s32.totalorder %s1256_s16, 1  ;;  %s940_s9 = sld [smem:[#allocation2 + $0x2]]  ;;  %vm653_vm0 = vcmask 130048  }
  0x3f   : > { %s939_s10 = sld [smem:[#allocation2 + $0x1]]  ;;  %s1210_s28 = smov 126  }
  0x40   : > { %s192_s11 = scalar_select %p191_p6, %s1256_s16, 1 }
  0x41   : > { %s942_s17 = sld [smem:[#allocation2 + $0x4]]  ;;  %s1211_s29 = smov 127  }
  0x42   : > { %s1043_s19 = smul.u32 96, %s192_s11  ;;  %s1822_s0 = sld [smem:[#allocation11_spill]] }
  0x43   : > { %s1325_s26 = sld [smem:[#allocation2 + $0x81]]  ;;  %p1823_p12 = scmp.ne.s32.totalorder %s1811_s22, 0 }
  0x44   : > { %v219_v0 = vstv %s940_s9  ;;  %s1333_s27 = sld [smem:[#allocation2 + $0x5]] }
  0x45   : > { %v205_v3 = vstv %s939_s10  ;;  %s951_s30 = sld [smem:[#allocation2 + $0x82]] }
  0x46   : > { %s965_s4 = sld [smem:[#allocation2 + $0x101]] }
  0x47   : > { %v241_v9 = vstv %s942_s17  ;;  %s966_s5 = sld [smem:[#allocation2 + $0x102]] }
  0x48   : > { %s1323_s25 = scalar_lea.vmem %s1822_s0, %s1043_s19  ;;  %s980_s6 = sld [smem:[#allocation2 + $0x181]] }
  0x49   : > { %v1328_v1 = vld [vmem:[%s1323_s25] sm:$0xff]  ;;  %v1331_v2 = vld [vmem:[%s1323_s25 + $0x8] sm:$0xff]  ;;  %v1352_v13 = vld [vmem:[%s1323_s25 + $0x18] sm:$0xff]  ;;  %v314_v14 = vstv %s1325_s26  ;;  %s955_s7 = sld [smem:[#allocation2 + $0x84]] }
  0x4a   : > { %v220_v4 = vmul.f32 %v219_v0, %v1328_v1  ;;  %v206_v5 = vmul.f32 %v205_v3, %v1328_v1  ;;  %v221_v6 = vmul.f32 %v219_v0, %v1331_v2  ;;  %v207_v7 = vmul.f32 %v205_v3, %v1331_v2  ;;  %v1342_v8 = vld [vmem:[%s1323_s25 + $0x9] sm:$0xff]  ;;  %v1345_v10 = vld [vmem:[%s1323_s25 + $0x1] sm:$0xff]  ;;  %v1375_v27 = vld [vmem:[%s1323_s25 + $0x38] sm:$0xff]  ;;  %s981_s8 = sld [smem:[#allocation2 + $0x182]] }
  0x4b   : > { %v243_v11 = vmul.f32 %v241_v9, %v1342_v8  ;;  %v242_v12 = vmul.f32 %v241_v9, %v1345_v10  ;;  %v255_v15 = vstv %s1333_s27  ;;  %v315_v16 = vmul.f32 %v1352_v13, %v314_v14  ;;  %v1361_v19 = vld [vmem:[%s1323_s25 + $0x20] sm:$0xff]  ;;  %v1368_v22 = vld [vmem:[%s1323_s25 + $0x30] sm:$0xff]  ;;  %v1382_v30 = vld [vmem:[%s1323_s25 + $0x48] sm:$0xff]  ;;  %s956_s9 = sld [smem:[#allocation2 + $0x85]] }
  0x4c   : > { %224 = vrot.lane.b32.xlu1 %v220_v4, %s1210_s28  ;;  %210 = vrot.lane.b32.xlu0 %v206_v5, %s1211_s29  ;;  %v256_v17 = vmul.f32 %v255_v15, %v1345_v10  ;;  %v328_v18 = vstv %s951_s30  ;;  %v316_v21 = vmul.f32 %v1361_v19, %v314_v14  ;;  %v423_v23 = vstv %s965_s4  ;;  %s970_s10 = sld [smem:[#allocation2 + $0x104]] }
  0x4d   : > { %v329_v20 = vmul.f32 %v1352_v13, %v328_v18  ;;  %v424_v24 = vmul.f32 %v1368_v22, %v423_v23  ;;  %v330_v25 = vmul.f32 %v1361_v19, %v328_v18  ;;  %v437_v26 = vstv %s966_s5  ;;  %v1389_v34 = vld [vmem:[%s1323_s25 + $0x19] sm:$0xff]  ;;  %v1392_v36 = vld [vmem:[%s1323_s25 + $0x50] sm:$0xff]  ;;  %v1399_v40 = vld [vmem:[%s1323_s25 + $0x21] sm:$0xff]  ;;  %s971_s11 = sld [smem:[#allocation2 + $0x105]] }
  0x4e   : > { %v438_v28 = vmul.f32 %v1368_v22, %v437_v26  ;;  %v425_v29 = vmul.f32 %v1375_v27, %v423_v23  ;;  %v532_v31 = vstv %s980_s6  ;;  %v439_v33 = vmul.f32 %v1375_v27, %v437_v26  ;;  %v1414_v48 = vld [vmem:[%s1323_s25 + $0x39] sm:$0xff]  ;;  %v1417_v50 = vld [vmem:[%s1323_s25 + $0x31] sm:$0xff]  ;;  %s985_s17 = sld [smem:[#allocation2 + $0x184]]  ;;  %v1431_v58 = vld [vmem:[%s1323_s25 + $0x49] sm:$0xff] }
  0x4f   : > { %v533_v32 = vmul.f32 %v1382_v30, %v532_v31  ;;  %v350_v35 = vstv %s955_s7  ;;  %v534_v38 = vmul.f32 %v1392_v36, %v532_v31  ;;  %v257_v43 = vmul.f32 %v255_v15, %v1342_v8  ;;  %s945_s19 = sld [smem:[#allocation2 + $0x7]]  ;;  %v1428_v56 = vld [vmem:[%s1323_s25 + $0x51] sm:$0xff]  ;;  %v1441_v63 = vld [vmem:[%s1323_s25 + $0x2] sm:$0xff]  ;;  %v1470_v23 = vld [vmem:[%s1323_s25 + $0x3a] sm:$0xff] }
  0x50   : > { %226 = vrot.lane.b32.xlu1 %v221_v6, %s1210_s28  ;;  %212 = vrot.lane.b32.xlu0 %v207_v7, %s1211_s29  ;;  %v351_v37 = vmul.f32 %v1389_v34, %v350_v35  ;;  %v546_v39 = vstv %s981_s8  ;;  %v352_v42 = vmul.f32 %v1399_v40, %v350_v35  ;;  %s960_s20 = sld [smem:[#allocation2 + $0x87]]  ;;  %v1438_v61 = vld [vmem:[%s1323_s25 + $0xa] sm:$0xff] }
  0x51   : > { %v547_v41 = vmul.f32 %v1382_v30, %v546_v39  ;;  %v548_v44 = vmul.f32 %v1392_v36, %v546_v39  ;;  %v364_v45 = vstv %s956_s9  ;;  %s986_s24 = sld [smem:[#allocation2 + $0x185]]  ;;  %v1448_v4 = vld [vmem:[%s1323_s25 + $0x22] sm:$0xff]  ;;  %v1451_v6 = vld [vmem:[%s1323_s25 + $0x1a] sm:$0xff] }
  0x52   : > { %v366_v46 = vmul.f32 %v1399_v40, %v364_v45  ;;  %v365_v47 = vmul.f32 %v1389_v34, %v364_v45  ;;  %v459_v49 = vstv %s970_s10  ;;  %s946_s26 = sld [smem:[#allocation2 + $0x8]] }
  0x53   : > { %v461_v51 = vmul.f32 %v1414_v48, %v459_v49  ;;  %v460_v52 = vmul.f32 %v1417_v50, %v459_v49  ;;  %v473_v53 = vstv %s971_s11  ;;  %s961_s27 = sld [smem:[#allocation2 + $0x88]] }
  0x54   : > { %248 = vrot.lane.b32.xlu1 %v243_v11, %s1211_s29  ;;  %246 = vrot.lane.b32.xlu0 %v242_v12, %s1211_s29  ;;  %v475_v54 = vmul.f32 %v1414_v48, %v473_v53  ;;  %v474_v55 = vmul.f32 %v1417_v50, %v473_v53  ;;  %v568_v57 = vstv %s985_s17  ;;  %s975_s30 = sld [smem:[#allocation2 + $0x107]] }
  0x55   : > { %v570_v59 = vmul.f32 %v1428_v56, %v568_v57  ;;  %v569_v60 = vmul.f32 %v1431_v58, %v568_v57  ;;  %v277_v62 = vstv %s945_s19  ;;  %s976_s4 = sld [smem:[#allocation2 + $0x108]] }
  0x56   : > { %v279_v0 = vmul.f32 %v277_v62, %v1438_v61  ;;  %v278_v3 = vmul.f32 %v277_v62, %v1441_v63  ;;  %v386_v5 = vstv %s960_s20  ;;  %s990_s5 = sld [smem:[#allocation2 + $0x187]] }
  0x57   : > { %v388_v7 = vmul.f32 %v1448_v4, %v386_v5  ;;  %v387_v9 = vmul.f32 %v1451_v6, %v386_v5  ;;  %v582_v11 = vstv %s986_s24  ;;  %s991_s6 = sld [smem:[#allocation2 + $0x188]] }
  0x58   : > { %319 = vrot.lane.b32.xlu1 %v315_v16, %s1211_s29  ;;  %260 = vrot.lane.b32.xlu0 %v256_v17, %s1210_s28  ;;  %v584_v12 = vmul.f32 %v1428_v56, %v582_v11  ;;  %v583_v14 = vmul.f32 %v1431_v58, %v582_v11  ;;  %v291_v15 = vstv %s946_s26  ;;  %s941_s7 = sld [smem:[#allocation2 + $0x3]] }
  0x59   : > { %v293_v16 = vmul.f32 %v291_v15, %v1438_v61  ;;  %v292_v17 = vmul.f32 %v291_v15, %v1441_v63  ;;  %v400_v18 = vstv %s961_s27  ;;  %s1500_s8 = sld [smem:[#allocation2 + $0x80]] }
  0x5a   : > { %s964_s9 = sld [smem:[#allocation2 + $0x100]] }
  0x5b   : > { %s969_s10 = sld [smem:[#allocation2 + $0x103]] }
  0x5c   : > { %333 = vrot.lane.b32.xlu1 %v329_v20, %s1210_s28  ;;  %321 = vrot.lane.b32.xlu0 %v316_v21, %s1211_s29  ;;  %v402_v20 = vmul.f32 %v1448_v4, %v400_v18  ;;  %v401_v21 = vmul.f32 %v1451_v6, %v400_v18  ;;  %v604_v35 = vstv %s990_s5  ;;  %s979_s11 = sld [smem:[#allocation2 + $0x180]] }
  0x5d   : > { %s984_s17 = sld [smem:[#allocation2 + $0x183]] }
  0x5e   : > { %s959_s19 = sld [smem:[#allocation2 + $0x86]] }
  0x5f   : > { %v308_v62 = vstv %s1500_s8  ;;  %s974_s20 = sld [smem:[#allocation2 + $0x106]] }
  0x60   : > { %428 = vrot.lane.b32.xlu1 %v424_v24, %s1211_s29  ;;  %335 = vrot.lane.b32.xlu0 %v330_v25, %s1210_s28  ;;  %v495_v24 = vstv %s975_s30  ;;  %v1473_v25 = vld [vmem:[%s1323_s25 + $0x32] sm:$0xff]  ;;  %v310_v18 = vmul.f32 %v1361_v19, %v308_v62  ;;  %s1534_s24 = sld [smem:[#allocation5]] }
  0x61   : > { %v497_v26 = vmul.f32 %v1470_v23, %v495_v24  ;;  %s1536_s26 = sld [smem:[#allocation5 + $0x80]] }
  0x62   : > { %s1538_s27 = sld [smem:[#allocation5 + $0x100]] }
  0x63   : > { %s1540_s30 = sld [smem:[#allocation5 + $0x180]] }
  0x64   : > { %442 = vrot.lane.b32.xlu1 %v438_v28, %s1210_s28  ;;  %430 = vrot.lane.b32.xlu0 %v425_v29, %s1211_s29  ;;  %v496_v28 = vmul.f32 %v1473_v25, %v495_v24  ;;  %v509_v29 = vstv %s976_s4  ;;  %s1544_s4 = sld [smem:[#allocation5 + $0x200]] }
  0x65   : > { %v511_v31 = vmul.f32 %v1470_v23, %v509_v29  ;;  %s1546_s5 = sld [smem:[#allocation5 + $0x280]] }
  0x66   : > { %s1556_s8 = sld [smem:[#allocation5 + $0x1]] }
  0x67   : > { %s1574_s0 = sld [smem:[#allocation5 + $0x82]] }
  0x68   : > { %537 = vrot.lane.b32.xlu1 %v533_v32, %s1211_s29  ;;  %444 = vrot.lane.b32.xlu0 %v439_v33, %s1210_s28  ;;  %v510_v32 = vmul.f32 %v1473_v25, %v509_v29  ;;  %v1484_v33 = vld [vmem:[%s1323_s25 + $0x52] sm:$0xff]  ;;  %s1576_s1 = sld [smem:[#allocation5 + $0x102]] }
  0x69   : > { %s1640_s2 = sld [smem:[#allocation5 + $0x203]] }
  0x6c   : > { %355 = vrot.lane.b32.xlu1 %v351_v37, %s1211_s29  ;;  %539 = vrot.lane.b32.xlu0 %v534_v38, %s1211_s29  ;;  %v1487_v37 = vld [vmem:[%s1323_s25 + $0x4a] sm:$0xff]  ;;  %v606_v38 = vmul.f32 %v1484_v33, %v604_v35  ;;  %s198_s25 = sld [smem:[#allocation2]] }
  0x6d   : > { %v605_v39 = vmul.f32 %v1487_v37, %v604_v35 }
  0x70   : > { %551 = vrot.lane.b32.xlu1 %v547_v41, %s1210_s28  ;;  %357 = vrot.lane.b32.xlu0 %v352_v42, %s1211_s29  ;;  %v618_v41 = vstv %s991_s6  ;;  %s1548_s6 = sld [smem:[#allocation5 + $0x300]] }
  0x71   : > { %v620_v42 = vmul.f32 %v1484_v33, %v618_v41 }
  0x74   : > { %262 = vrot.lane.b32.xlu1 %v257_v43, %s1210_s28  ;;  %553 = vrot.lane.b32.xlu0 %v548_v44, %s1210_s28  ;;  %v619_v43 = vmul.f32 %v1487_v37, %v618_v41  ;;  %v199_v44 = vstv %s198_s25  ;;  %s1550_s25 = sld [smem:[#allocation5 + $0x380]] }
  0x75   : > { %v200_v45 = vmul.f32 %v199_v44, %v1328_v1 }
  0x78   : > { %371 = vrot.lane.b32.xlu1 %v366_v46, %s1210_s28  ;;  %369 = vrot.lane.b32.xlu0 %v365_v47, %s1210_s28  ;;  %v235_v46 = vstv %s941_s7  ;;  %s989_s7 = sld [smem:[#allocation2 + $0x186]] }
  0x79   : > { %v236_v53 = vmul.f32 %v235_v46, %v1345_v10  ;;  %v309_v10 = vmul.f32 %v1352_v13, %v308_v62 }
  0x7c   : > { %466 = vrot.lane.b32.xlu1 %v461_v51, %s1211_s29  ;;  %464 = vrot.lane.b32.xlu0 %v460_v52, %s1211_s29  ;;  %v201_v52 = vmul.f32 %v199_v44, %v1331_v2 }
  0x80   : > { %480 = vrot.lane.b32.xlu1 %v475_v54, %s1210_s28  ;;  %478 = vrot.lane.b32.xlu0 %v474_v55, %s1210_s28 }
  0x84   : > { %575 = vrot.lane.b32.xlu1 %v570_v59, %s1211_s29  ;;  %573 = vrot.lane.b32.xlu0 %v569_v60, %s1211_s29  ;;  %v237_v59 = vmul.f32 %v235_v46, %v1342_v8 }
  0x88   : > { %284 = vrot.lane.b32.xlu1 %v279_v0, %s1211_s29  ;;  %282 = vrot.lane.b32.xlu0 %v278_v3, %s1211_s29 }
  0x8c   : > { %393 = vrot.lane.b32.xlu1 %v388_v7, %s1211_s29  ;;  %391 = vrot.lane.b32.xlu0 %v387_v9, %s1211_s29 }
  0x90   : > { %589 = vrot.lane.b32.xlu1 %v584_v12, %s1210_s28  ;;  %587 = vrot.lane.b32.xlu0 %v583_v14, %s1210_s28 }
  0x94   : > { %298 = vrot.lane.b32.xlu1 %v293_v16, %s1210_s28  ;;  %296 = vrot.lane.b32.xlu0 %v292_v17, %s1210_s28 }
  0x98   : > { %407 = vrot.lane.b32.xlu1 %v402_v20, %s1210_s28  ;;  %405 = vrot.lane.b32.xlu0 %v401_v21, %s1210_s28 }
  0x9c   : > { %502 = vrot.lane.b32.xlu1 %v497_v26, %s1211_s29  ;;  %500 = vrot.lane.b32.xlu0 %v496_v28, %s1211_s29  ;;  %v417_v28 = vstv %s964_s9  ;;  %s1562_s9 = sld [smem:[#allocation5 + $0x181]] }
  0xa0   : > { %516 = vrot.lane.b32.xlu1 %v511_v31, %s1210_s28  ;;  %514 = vrot.lane.b32.xlu0 %v510_v32, %s1210_s28  ;;  %v418_v31 = vmul.f32 %v1368_v22, %v417_v28 }
  0xa4   : > { %611 = vrot.lane.b32.xlu1 %v606_v38, %s1211_s29  ;;  %609 = vrot.lane.b32.xlu0 %v605_v39, %s1211_s29  ;;  %s1502_s29 = sld [smem:[#allocation2 + $0x6]]  ;;  %v453_v39 = vstv %s969_s10 }
  0xa5   : > { %v455_v22 = vmul.f32 %v1414_v48, %v453_v39  ;;  %s1564_s10 = sld [smem:[#allocation5 + $0x201]] }
  0xa8   : > { %625 = vrot.lane.b32.xlu1 %v620_v42, %s1210_s28  ;;  %623 = vrot.lane.b32.xlu0 %v619_v43, %s1210_s28  ;;  %s1506_s28 = sld [smem:[#allocation2 + $0x83]]  ;;  %v454_v43 = vmul.f32 %v1417_v50, %v453_v39 }
  0xaa   : > { %v271_v7 = vstv %s1502_s29  ;;  %s1558_s29 = sld [smem:[#allocation5 + $0x81]] }
  0xab   : > { %v272_v12 = vmul.f32 %v271_v7, %v1441_v63 }
  0xae   : > { %v344_v16 = vstv %s1506_s28  ;;  %s1560_s28 = sld [smem:[#allocation5 + $0x101]] }
  0xaf   : > { %v345_v20 = vmul.f32 %v1389_v34, %v344_v16  ;;  %v346_v32 = vmul.f32 %v1399_v40, %v344_v16  ;;  %v419_v34 = vmul.f32 %v1375_v27, %v417_v28  ;;  %v526_v40 = vstv %s979_s11  ;;  %s1566_s11 = sld [smem:[#allocation5 + $0x281]] }
  0xbe   : > { %v225_v47 = vpop.permute.xlu1 %224  ;;  %v211_v49 = vpop.permute.xlu0 %210 }
  0xbf   : > { %v216_v51 = vadd.f32 %v211_v49, %v200_v45 }
  0xc1   : > { %v230_v54 = vadd.f32 %v225_v47, %v216_v51 }
  0xc2   : > { %v227_v55 = vpop.permute.xlu1 %226  ;;  %v213_v57 = vpop.permute.xlu0 %212 }
  0xc3   : > { %v217_v1 = vadd.f32 %v213_v57, %v201_v52  ;;  %v238_v60 = vadd.f32 %v236_v53, %v230_v54  ;;  %v527_v54 = vmul.f32 %v1382_v30, %v526_v40  ;;  %v380_v30 = vstv %s959_s19  ;;  %s1570_s19 = sld [smem:[#allocation5 + $0x381]] }
  0xc4   : > { %v382_v16 = vmul.f32 %v1448_v4, %v380_v30 }
  0xc5   : > { %v231_v0 = vadd.f32 %v227_v55, %v217_v1  ;;  %v562_v1 = vstv %s984_s17  ;;  %s1568_s17 = sld [smem:[#allocation5 + $0x301]] }
  0xc6   : > { %v249_v3 = vpop.permute.xlu1 %248  ;;  %v247_v5 = vpop.permute.xlu0 %246 }
  0xc7   : > { %v239_v9 = vadd.f32 %v237_v59, %v231_v0  ;;  %v252_v2 = vadd.f32 %v247_v5, %v238_v60  ;;  %v528_v59 = vmul.f32 %v1392_v36, %v526_v40  ;;  %v563_v60 = vmul.f32 %v1431_v58, %v562_v1 }
  0xc8   : > { %v381_v36 = vmul.f32 %v1451_v6, %v380_v30  ;;  %v711_v30 = vstv %s1562_s9  ;;  %s188_s9 = sand.u32 1, %s1198_s13  }
  0xc9   : > { %v253_v11 = vadd.f32 %v249_v3, %v239_v9  ;;  %v564_v3 = vmul.f32 %v1428_v56, %v562_v1 }
  0xca   : > { %v320_v14 = vpop.permute.xlu1 %319  ;;  %v261_v15 = vpop.permute.xlu0 %260 }
  0xcb   : > { %v325_v17 = vadd.f32 %v320_v14, %v309_v10  ;;  %v266_v8 = vadd.f32 %v261_v15, %v252_v2  ;;  %v273_v2 = vmul.f32 %v271_v7, %v1438_v61 }
  0xcd   : > { %v1516_v21 = vadd.f32 %v272_v12, %v266_v8 }
  0xce   : > { %v334_v24 = vpop.permute.xlu1 %333  ;;  %v322_v26 = vpop.permute.xlu0 %321 }
  0xcf   : > { %v339_v29 = vadd.f32 %v334_v24, %v325_v17  ;;  %v326_v13 = vadd.f32 %v322_v26, %v310_v18 }
  0xd1   : > { %v347_v63 = vadd.f32 %v345_v20, %v339_v29 }
  0xd2   : > { %v429_v35 = vpop.permute.xlu1 %428  ;;  %v336_v38 = vpop.permute.xlu0 %335 }
  0xd3   : > { %v340_v41 = vadd.f32 %v336_v38, %v326_v13  ;;  %v434_v19 = vadd.f32 %v429_v35, %v418_v31 }
  0xd5   : > { %v348_v42 = vadd.f32 %v346_v32, %v340_v41 }
  0xd6   : > { %v443_v44 = vpop.permute.xlu1 %442  ;;  %v431_v45 = vpop.permute.xlu0 %430 }
  0xd7   : > { %v448_v46 = vadd.f32 %v443_v44, %v434_v19  ;;  %v435_v47 = vadd.f32 %v431_v45, %v419_v34  ;;  %v598_v44 = vstv %s989_s7  ;;  %s1638_s7 = sld [smem:[#allocation5 + $0x183]] }
  0xd9   : > { %v456_v49 = vadd.f32 %v454_v43, %v448_v46 }
  0xda   : > { %v538_v51 = vpop.permute.xlu1 %537  ;;  %v445_v52 = vpop.permute.xlu0 %444 }
  0xdb   : > { %v449_v53 = vadd.f32 %v445_v52, %v435_v47  ;;  %v543_v50 = vadd.f32 %v538_v51, %v527_v54  ;;  %v600_v47 = vmul.f32 %v1484_v33, %v598_v44  ;;  %v657_v54 = vstv %s1536_s26  ;;  %s1608_s26 = sld [smem:[#allocation5 + $0x202]] }
  0xdc   : > { %v757_v33 = vstv %s1546_s5  ;;  %s1616_s5 = sld [smem:[#allocation5 + $0x3]] }
  0xdd   : > { %v457_v55 = vadd.f32 %v455_v22, %v449_v53  ;;  %v599_v22 = vmul.f32 %v1487_v37, %v598_v44  ;;  %v632_v53 = vstv %s1534_s24  ;;  %s1604_s24 = sld [smem:[#allocation5 + $0x182]] }
  0xde   : > { %v356_v27 = vpop.permute.xlu1 %355  ;;  %v540_v57 = vpop.permute.xlu0 %539 }
  0xdf   : > { %v544_v5 = vadd.f32 %v540_v57, %v528_v59  ;;  %v361_v58 = vadd.f32 %v356_v27, %v347_v63  ;;  %v707_v27 = vstv %s1540_s30  ;;  %v732_v57 = vstv %s1544_s4  ;;  %s1612_s30 = sld [smem:[#allocation5 + $0x302]] }
  0xe0   : > { %s1614_s4 = sld [smem:[#allocation5 + $0x382]] }
  0xe2   : > { %v552_v62 = vpop.permute.xlu1 %551  ;;  %v358_v0 = vpop.permute.xlu0 %357 }
  0xe3   : > { %v557_v48 = vadd.f32 %v552_v62, %v543_v50  ;;  %v362_v17 = vadd.f32 %v358_v0, %v348_v42  ;;  %v807_v62 = vstv %s1550_s25  ;;  %s1636_s25 = sld [smem:[#allocation5 + $0x103]] }
  0xe5   : > { %v565_v9 = vadd.f32 %v563_v60, %v557_v48  ;;  %v782_v60 = vstv %s1548_s6  ;;  %s1626_s6 = sld [smem:[#allocation5 + $0x83]] }
  0xe6   : > { %v263_v10 = vpop.permute.xlu1 %262  ;;  %v554_v12 = vpop.permute.xlu0 %553 }
  0xe7   : > { %v267_v14 = vadd.f32 %v263_v10, %v253_v11  ;;  %v558_v15 = vadd.f32 %v554_v12, %v544_v5  ;;  %v489_v11 = vstv %s974_s20  ;;  %s1572_s20 = sld [smem:[#allocation5 + $0x2]]  ;;  %v736_v12 = vstv %s1564_s10 }
  0xe8   : > { %v491_v13 = vmul.f32 %v1470_v23, %v489_v11  ;;  %v490_v31 = vmul.f32 %v1473_v25, %v489_v11 }
  0xe9   : > { %v566_v8 = vadd.f32 %v564_v3, %v558_v15  ;;  %v275_v18 = vadd.f32 %v273_v2, %v267_v14  ;;  %v636_v3 = vstv %s1556_s8  ;;  %v686_v2 = vstv %s1560_s28  ;;  %s1669_s8 = sld [smem:[#allocation5 + $0x283]] }
  0xea   : > { %v372_v20 = vpop.permute.xlu1 %371  ;;  %v370_v56 = vpop.permute.xlu0 %369  ;;  %v761_v14 = vstv %s1566_s11  ;;  %v786_v15 = vstv %s1568_s17  ;;  %s1682_s28 = sld [smem:[#allocation5 + $0x383]] }
  0xeb   : > { %v376_v24 = vadd.f32 %v372_v20, %v362_v17  ;;  %v375_v26 = vadd.f32 %v370_v56, %v361_v58  ;;  %v667_v58 = vstv %s1574_s0  ;;  %v692_v17 = vstv %s1576_s1  ;;  %s937_s0 = sshll.u32 %s188_s9, 7  ;;  %s1042_s1 = sshll.u32 %s1256_s16, 11 }
  0xec   : > { %s1707_s10 = scalar_lea.vmem [#allocation7], %s937_s0 }
  0xed   : > { %v1530_v28 = vadd.f32 %v382_v16, %v376_v24  ;;  %v1532_v61 = vadd.f32 %v381_v36, %v375_v26  ;;  %v811_v16 = vstv %s1570_s19  ;;  %v642_v36 = vstv %s1572_s20  ;;  %s845_s11 = sshll.u32 %s1707_s10, 4  ;;  %s1761_s19 = scalar_lea.sflag [#allocation3], %s188_s9  ;;  %s1741_s11 = int_to_ptr.vmem [resolvable:$true] %s845_s11 }
  0xee   : > { %v467_v7 = vpop.permute.xlu1 %466  ;;  %v465_v29 = vpop.permute.xlu0 %464  ;;  %s1138_s20 = scalar_lea.vmem %s1741_s11, 2048 }
  0xef   : > { %v471_v4 = vadd.f32 %v467_v7, %v457_v55  ;;  %v470_v6 = vadd.f32 %v465_v29, %v456_v49  ;;  %v682_v55 = vstv %s1538_s27  ;;  %s1610_s27 = sld [smem:[#allocation5 + $0x282]]  ;;  %p1139_p10 = scmp.ne.s32.totalorder %s1741_s11, %s1138_s20 }
  0xf1   : > { %p1140_p0 = pnand %p1139_p10, %p1823_p12 }
  0xf2   : > { %v481_v63 = vpop.permute.xlu1 %480  ;;  %v479_v32 = vpop.permute.xlu0 %478 }
  0xf3   : > { %v485_v35 = vadd.f32 %v481_v63, %v471_v4  ;;  %v484_v38 = vadd.f32 %v479_v32, %v470_v6  ;;  %p1141_p7 = pneg %p1140_p0 }
  0xf5   : > { %v1552_v39 = vadd.f32 %v491_v13, %v485_v35  ;;  %v1554_v41 = vadd.f32 %v490_v31, %v484_v38 }
  0xf6   : > { %v576_v19 = vpop.permute.xlu1 %575  ;;  %v574_v23 = vpop.permute.xlu0 %573 }
  0xf7   : > { %v580_v45 = vadd.f32 %v576_v19, %v566_v8  ;;  %v579_v46 = vadd.f32 %v574_v23, %v565_v9  ;;  %v661_v9 = vstv %s1558_s29  ;;  %s1674_s29 = sld [smem:[#allocation5 + $0x303]] }
  0xfa   : > { %v285_v25 = vpop.permute.xlu1 %284  ;;  %v283_v34 = vpop.permute.xlu0 %282 }
  0xfb   : > { %v289_v1 = vadd.f32 %v285_v25, %v275_v18  ;;  %v288_v59 = vadd.f32 %v283_v34, %v1516_v21 }
  0xfe   : > { %v394_v42 = vpop.permute.xlu1 %393  ;;  %v392_v43 = vpop.permute.xlu0 %391 }
  0xff   : > { %v398_v21 = vadd.f32 %v394_v42, %v1530_v28  ;;  %v397_v8 = vadd.f32 %v392_v43, %v1532_v61 }
 0x102   : > { %v590_v49 = vpop.permute.xlu1 %589  ;;  %v588_v40 = vpop.permute.xlu0 %587 }
 0x103   : > { %v594_v51 = vadd.f32 %v590_v49, %v580_v45  ;;  %v593_v52 = vadd.f32 %v588_v40, %v579_v46 }
 0x105   : > { %v1586_v37 = vadd.f32 %v600_v47, %v594_v51  ;;  %v1588_v50 = vadd.f32 %v599_v22, %v593_v52 }
 0x106   : > { %v299_v0 = vpop.permute.xlu1 %298  ;;  %v297_v48 = vpop.permute.xlu0 %296 }
 0x107   : > { %v303_v5 = vadd.f32 %v299_v0, %v289_v1  ;;  %v302_v10 = vadd.f32 %v297_v48, %v288_v59 }
 0x109   : > { %v634_v18 = vmul.f32 %v632_v53, %v303_v5  ;;  %v659_v20 = vmul.f32 %v657_v54, %v303_v5  ;;  %v684_v26 = vmul.f32 %v682_v55, %v303_v5  ;;  %v709_v7 = vmul.f32 %v707_v27, %v303_v5 }
 0x10a   : > { %v408_v56 = vpop.permute.xlu1 %407  ;;  %v406_v24 = vpop.permute.xlu0 %405  ;;  %v734_v29 = vmul.f32 %v732_v57, %v303_v5  ;;  %v759_v11 = vmul.f32 %v757_v33, %v303_v5  ;;  %v784_v4 = vmul.f32 %v782_v60, %v303_v5  ;;  %v809_v6 = vmul.f32 %v807_v62, %v303_v5 }
 0x10b   : > { %v633_v13 = vmul.f32 %v632_v53, %v302_v10  ;;  %v658_v28 = vmul.f32 %v657_v54, %v302_v10  ;;  %v683_v61 = vmul.f32 %v682_v55, %v302_v10  ;;  %v708_v31 = vmul.f32 %v707_v27, %v302_v10 }
 0x10c   : > { %v733_v63 = vmul.f32 %v732_v57, %v302_v10  ;;  %v412_v32 = vadd.f32 %v408_v56, %v398_v21  ;;  %v758_v35 = vmul.f32 %v757_v33, %v302_v10  ;;  %v783_v38 = vmul.f32 %v782_v60, %v302_v10 }
 0x10d   : > { %v808_v19 = vmul.f32 %v807_v62, %v302_v10  ;;  %v411_v23 = vadd.f32 %v406_v24, %v397_v8  ;;  %v717_v56 = vstv %s1604_s24  ;;  %s1212_s24 = smov [#allocation7]  }
 0x10e   : > { %v503_v25 = vpop.permute.xlu1 %502  ;;  %v501_v34 = vpop.permute.xlu0 %500  ;;  %v638_v42 = vmul.f32 %v636_v3, %v412_v32  ;;  %v663_v43 = vmul.f32 %v661_v9, %v412_v32  ;;  %v688_v44 = vmul.f32 %v686_v2, %v412_v32  ;;  %v713_v45 = vmul.f32 %v711_v30, %v412_v32 }
 0x10f   : > { %v738_v46 = vmul.f32 %v736_v12, %v412_v32  ;;  %v763_v47 = vmul.f32 %v761_v14, %v412_v32  ;;  %v788_v22 = vmul.f32 %v786_v15, %v412_v32  ;;  %v813_v49 = vmul.f32 %v811_v16, %v412_v32 }
 0x110   : > { %v640_v40 = vadd.f32 %v638_v42, %v634_v18  ;;  %v665_v51 = vadd.f32 %v663_v43, %v659_v20  ;;  %v690_v52 = vadd.f32 %v688_v44, %v684_v26  ;;  %v715_v53 = vadd.f32 %v713_v45, %v709_v7 }
 0x111   : > { %v740_v54 = vadd.f32 %v738_v46, %v734_v29  ;;  %v765_v55 = vadd.f32 %v763_v47, %v759_v11  ;;  %v790_v27 = vadd.f32 %v788_v22, %v784_v4  ;;  %v815_v57 = vadd.f32 %v813_v49, %v809_v6 }
 0x112   : > { %v517_v1 = vpop.permute.xlu1 %516  ;;  %v515_v33 = vpop.permute.xlu0 %514  ;;  %v637_v59 = vmul.f32 %v636_v3, %v411_v23  ;;  %v662_v60 = vmul.f32 %v661_v9, %v411_v23  ;;  %v687_v62 = vmul.f32 %v686_v2, %v411_v23  ;;  %v712_v0 = vmul.f32 %v711_v30, %v411_v23 }
 0x113   : > { %v737_v48 = vmul.f32 %v736_v12, %v411_v23  ;;  %v762_v5 = vmul.f32 %v761_v14, %v411_v23  ;;  %v787_v10 = vmul.f32 %v786_v15, %v411_v23  ;;  %v812_v21 = vmul.f32 %v811_v16, %v411_v23 }
 0x114   : > { %v639_v8 = vadd.f32 %v637_v59, %v633_v13  ;;  %v664_v3 = vadd.f32 %v662_v60, %v658_v28  ;;  %v689_v9 = vadd.f32 %v687_v62, %v683_v61  ;;  %v714_v18 = vadd.f32 %v712_v0, %v708_v31 }
 0x115   : > { %v739_v2 = vadd.f32 %v737_v48, %v733_v63  ;;  %v764_v30 = vadd.f32 %v762_v5, %v758_v35  ;;  %v789_v20 = vadd.f32 %v787_v10, %v783_v38  ;;  %v814_v12 = vadd.f32 %v812_v21, %v808_v19 }
 0x116   : > { %v507_v14 = vadd.f32 %v503_v25, %v1552_v39  ;;  %v742_v15 = vstv %s1608_s26  ;;  %v767_v16 = vstv %s1610_s27  ;;  %v612_v24 = vpop.permute.xlu1 %611  ;;  %v610_v26 = vpop.permute.xlu0 %609  ;;  %v506_v7 = vadd.f32 %v501_v34, %v1554_v41  ;;  %s1142_s26 = sshll.u32 %s1212_s24, 4  ;;  %s1143_s26 = int_to_ptr.vmem [resolvable:$false] %s1142_s26 }
 0x117   : > { %v792_v29 = vstv %s1612_s30  ;;  %v817_v11 = vstv %s1614_s4  ;;  %v648_v4 = vstv %s1616_s5  ;;  %v673_v13 = vstv %s1626_s6  ;;  %s1144_s27 = scalar_lea.vmem %s1143_s26, 4096  ;;  %p1145_p8 = scmp.lt.s32.totalorder %s1741_s11, %s1143_s26 }
 0x118   : > { %v521_v6 = vadd.f32 %v517_v1, %v507_v14  ;;  %v698_v28 = vstv %s1636_s25  ;;  %v723_v61 = vstv %s1638_s7  ;;  %v520_v39 = vadd.f32 %v515_v33, %v506_v7  ;;  %p1146_p11 = scmp.lt.s32.totalorder %s1144_s27, %s1138_s20 }
 0x119   : > { %v616_v31 = vadd.f32 %v612_v24, %v1586_v37  ;;  %v615_v63 = vadd.f32 %v610_v26, %v1588_v50  ;;  %v748_v32 = vstv %s1640_s2  ;;  %v773_v48 = vstv %s1669_s8  ;;  %s1739_s2 = scalar_lea.hbm %s1804_s3, %s1042_s1 }
 0x11a   : > { %v644_v41 = vmul.f32 %v642_v36, %v521_v6  ;;  %v669_v35 = vmul.f32 %v667_v58, %v521_v6  ;;  %v694_v38 = vmul.f32 %v692_v17, %v521_v6  ;;  %v719_v19 = vmul.f32 %v717_v56, %v521_v6  ;;  %p1147_p13 = por %p1146_p11, %p1145_p8 }
 0x11b   : > { %v744_v23 = vmul.f32 %v742_v15, %v521_v6  ;;  %v769_v37 = vmul.f32 %v767_v16, %v521_v6  ;;  %v794_v25 = vmul.f32 %v792_v29, %v521_v6  ;;  %v819_v50 = vmul.f32 %v817_v11, %v521_v6 }
 0x11c   : > { %v646_v34 = vadd.f32 %v644_v41, %v640_v40  ;;  %v671_v42 = vadd.f32 %v669_v35, %v665_v51  ;;  %v696_v43 = vadd.f32 %v694_v38, %v690_v52  ;;  %v721_v44 = vadd.f32 %v719_v19, %v715_v53  ;;  %v626_v53 = vpop.permute.xlu1 %625  ;;  %p1148_p1 = pnand %p1147_p13, %p1141_p7 }
 0x11d   : > { %v746_v45 = vadd.f32 %v744_v23, %v740_v54  ;;  %v771_v46 = vadd.f32 %v769_v37, %v765_v55  ;;  %v796_v47 = vadd.f32 %v794_v25, %v790_v27  ;;  %v821_v22 = vadd.f32 %v819_v50, %v815_v57 }
 0x11e   : > { %v643_v49 = vmul.f32 %v642_v36, %v520_v39  ;;  %v668_v1 = vmul.f32 %v667_v58, %v520_v39  ;;  %v693_v33 = vmul.f32 %v692_v17, %v520_v39  ;;  %v718_v59 = vmul.f32 %v717_v56, %v520_v39  ;;  %v624_v17 = vpop.permute.xlu0 %623 }
 0x11f   : > { %v743_v60 = vmul.f32 %v742_v15, %v520_v39  ;;  %v768_v40 = vmul.f32 %v767_v16, %v520_v39  ;;  %v793_v51 = vmul.f32 %v792_v29, %v520_v39  ;;  %v818_v52 = vmul.f32 %v817_v11, %v520_v39 }
 0x120   : > { %v645_v54 = vadd.f32 %v643_v49, %v639_v8  ;;  %v670_v55 = vadd.f32 %v668_v1, %v664_v3  ;;  %v695_v36 = vadd.f32 %v693_v33, %v689_v9  ;;  %v720_v58 = vadd.f32 %v718_v59, %v714_v18 }
 0x121   : > { %v745_v27 = vadd.f32 %v743_v60, %v739_v2  ;;  %v770_v57 = vadd.f32 %v768_v40, %v764_v30  ;;  %v795_v62 = vadd.f32 %v793_v51, %v789_v20  ;;  %v820_v0 = vadd.f32 %v818_v52, %v814_v12 }
 0x122   : > { %v798_v5 = vstv %s1674_s29  ;;  %v823_v10 = vstv %s1682_s28  ;;  %v630_v21 = vadd.f32 %v626_v53, %v616_v31  ;;  %v629_v8 = vadd.f32 %v624_v17, %v615_v63 }
 0x124   : > { %v650_v3 = vmul.f32 %v648_v4, %v630_v21  ;;  %v675_v9 = vmul.f32 %v673_v13, %v630_v21  ;;  %v700_v18 = vmul.f32 %v698_v28, %v630_v21  ;;  %v725_v2 = vmul.f32 %v723_v61, %v630_v21 }
 0x125   : > { %v750_v30 = vmul.f32 %v748_v32, %v630_v21  ;;  %v775_v20 = vmul.f32 %v773_v48, %v630_v21  ;;  %v800_v12 = vmul.f32 %v798_v5, %v630_v21  ;;  %v825_v14 = vmul.f32 %v823_v10, %v630_v21 }
 0x126   : > { %v652_v56 = vadd.f32 %v650_v3, %v646_v34  ;;  %v677_v15 = vadd.f32 %v675_v9, %v671_v42  ;;  %v702_v16 = vadd.f32 %v700_v18, %v696_v43  ;;  %v727_v24 = vadd.f32 %v725_v2, %v721_v44 }
 0x127   : > { %v752_v26 = vadd.f32 %v750_v30, %v746_v45  ;;  %v777_v7 = vadd.f32 %v775_v20, %v771_v46  ;;  %v802_v29 = vadd.f32 %v800_v12, %v796_v47  ;;  %v827_v11 = vadd.f32 %v825_v14, %v821_v22 }
 0x128   : > { %655 = vst.msk [vmem:[%s1707_s10 + $0x8] sm:$0xff] %vm653_vm0, %v652_v56  ;;  %1000 = vst.msk [vmem:[%s1707_s10 + $0x18] sm:$0xff] %vm653_vm0, %v677_v15  ;;  %v649_v6 = vmul.f32 %v648_v4, %v629_v8  ;;  %v674_v39 = vmul.f32 %v673_v13, %v629_v8  ;;  %v699_v31 = vmul.f32 %v698_v28, %v629_v8 }
 0x129   : > { %1006 = vst.msk [vmem:[%s1707_s10 + $0x28] sm:$0xff] %vm653_vm0, %v702_v16  ;;  %1012 = vst.msk [vmem:[%s1707_s10 + $0x38] sm:$0xff] %vm653_vm0, %v727_v24  ;;  %v724_v63 = vmul.f32 %v723_v61, %v629_v8  ;;  %v749_v41 = vmul.f32 %v748_v32, %v629_v8  ;;  %v774_v4 = vmul.f32 %v773_v48, %v629_v8 }
 0x12a   : > { %1018 = vst.msk [vmem:[%s1707_s10 + $0x48] sm:$0xff] %vm653_vm0, %v752_v26  ;;  %1024 = vst.msk [vmem:[%s1707_s10 + $0x58] sm:$0xff] %vm653_vm0, %v777_v7  ;;  %v799_v13 = vmul.f32 %v798_v5, %v629_v8  ;;  %v824_v28 = vmul.f32 %v823_v10, %v629_v8  ;;  %v651_v61 = vadd.f32 %v649_v6, %v645_v54 }
 0x12b   : > { %1030 = vst.msk [vmem:[%s1707_s10 + $0x68] sm:$0xff] %vm653_vm0, %v802_v29  ;;  %1036 = vst.msk [vmem:[%s1707_s10 + $0x78] sm:$0xff] %vm653_vm0, %v827_v11  ;;  %v676_v35 = vadd.f32 %v674_v39, %v670_v55  ;;  %v701_v38 = vadd.f32 %v699_v31, %v695_v36  ;;  %v726_v19 = vadd.f32 %v724_v63, %v720_v58 }
 0x12c   : > { %v751_v32 = vadd.f32 %v749_v41, %v745_v27  ;;  %v776_v23 = vadd.f32 %v774_v4, %v770_v57  ;;  %v801_v37 = vadd.f32 %v799_v13, %v795_v62  ;;  %v826_v25 = vadd.f32 %v824_v28, %v820_v0  ;;  %654 = vst.msk [vmem:[%s1707_s10] sm:$0xff] %vm653_vm0, %v651_v61 }
 0x12d   : > { %999 = vst.msk [vmem:[%s1707_s10 + $0x10] sm:$0xff] %vm653_vm0, %v676_v35  ;;  %1005 = vst.msk [vmem:[%s1707_s10 + $0x20] sm:$0xff] %vm653_vm0, %v701_v38 }
 0x12e   : > { %1011 = vst.msk [vmem:[%s1707_s10 + $0x30] sm:$0xff] %vm653_vm0, %v726_v19  ;;  %1017 = vst.msk [vmem:[%s1707_s10 + $0x40] sm:$0xff] %vm653_vm0, %v751_v32 }
 0x12f   : > { %1023 = vst.msk [vmem:[%s1707_s10 + $0x50] sm:$0xff] %vm653_vm0, %v776_v23  ;;  %1029 = vst.msk [vmem:[%s1707_s10 + $0x60] sm:$0xff] %vm653_vm0, %v801_v37 }
 0x130   : > { %1035 = vst.msk [vmem:[%s1707_s10 + $0x70] sm:$0xff] %vm653_vm0, %v826_v25 }
 0x131   : > { %1151 = shalt.err (!%p1148_p1)
}
 0x132   : > { %s1152_s30 = scalar_lea.hbm %s1739_s2, 2048  ;;  %s1156_s6 = scalar_lea.hbm %s1804_s3, 4096 }
 0x133   : > { %p1153_p2 = scmp.ne.s32.totalorder %s1739_s2, %s1152_s30  ;;  %p1157_p9 = scmp.lt.s32.totalorder %s1739_s2, %s1804_s3 }
 0x134   : > { %p1158_p5 = scmp.lt.s32.totalorder %s1156_s6, %s1152_s30 }
 0x135   : > { %p1154_p3 = pnand %p1153_p2, %p1823_p12 }
 0x136   : > { %p1159_p6 = por %p1158_p5, %p1157_p9 }
 0x137   : > { %p1155_p4 = pneg %p1154_p3 }
 0x139   : > { %p1160_p10 = pnand %p1159_p6, %p1155_p4 }
 0x13b   : > { %1163 = shalt.err (!%p1160_p10)
}
 0x13c   : > { %s1213_s8 = smov 128   ;;  %s1214_s29 = smov 8  }
 0x13d   : > { %1052 = dma.vmem_to_hbm [thread:$0]  (%p1823_p12), %s1741_s11, 2048, %s1739_s2, %s1761_s19, %s1213_s8, %s1213_s8, %s1214_s29  }
 0x13e PF: > { %p1069_p0 = scmp.ge.s32.totalorder %s1206_s15, 2  ;;  %s860_s28 = sand.u32 1, %s1194_s12  }
 0x13f   : > { %p1824_p7 = scmp.ne.s32.totalorder %s1812_s23, 0  ;;  %s861_s9 = scalar_lea.sflag [#allocation3], %s860_s28 }
 0x141   : > { %p1062_p8 = pnand %p1069_p0, %p1824_p7 }
 0x143   : > { %p1063_p11 = pneg %p1062_p8 }
 0x145   : > { %1189 = dma.done.wait (%p1063_p11), %s861_s9, 2048  }
 0x146   : > { %1191 = vsyncadd (%p1063_p11), %s861_s9, 4294965248  ;;  %p15_p13 = scmp.ge.s32.totalorder %s1260_s18, 4   ;;  %s1825_s12 = smov %s1198_s13 }
 0x147   : > { %s1826_s13 = smov %s1202_s14  ;;  %s1827_s14 = smov %s1271_s21 }
 0x148   : > { %s1828_s15 = smov %s1260_s18  ;;  %17 = sbr.rel (!%p15_p13) target bundleno = 9 (0x9), region = 86 }
 0x14d   :  { %866 = vsyncpa [#allocation3], 1 }
 0x14e   :  { %868 = vsyncpa [#allocation3 + $0x1], 1 }
 0x14f   :  { %869 = vsyncpa [#allocation4], 1 }
 0x150   :  { %871 = vsyncpa [#allocation4 + $0x1], 1 }
 0x151   :  { %872 = vsyncpa [#allocation6], 1 }

</bundles_post_ra>
